<compile_context>
chip_gen: v7x
topology: tpu7x:2x2x1
jax: 0.10.0
libtpu: 0.0.40
codegen_flags: <defaults>
</compile_context>

<pallas_src>
import jax
import jax.numpy as jnp
import numpy as np
from jax.experimental import pallas as pl
from jax.experimental.pallas import tpu as pltpu


# ----------------------------- Pallas kernel --------------------------------

def fused_cnn_kernel(x_ref, c1_ref, b1t_ref, c2_ref, b2t_ref,
                     ew1_ref, sh1_ref, ew2_ref, sh2_ref,
                     w1r_ref, bf1_ref, w2r_ref, bf2_ref, o_ref):
    f32 = jnp.float32

    def dot(a, b):
        return jnp.dot(a, b, preferred_element_type=f32)

    K = c1_ref.shape[0]                      # conv kernel height (3)
    x2d = x_ref[0]                           # (30, 30) -- one batch element

    # ---- conv1 (3x3 valid, 1->8) + bias + relu : (28, 28*8) ----------------
    oh1 = x2d.shape[0] - K + 1               # 28
    acc = dot(x2d[0:oh1, :], c1_ref[0])
    for kh in range(1, K):
        acc = acc + dot(x2d[kh:kh + oh1, :], c1_ref[kh])
    y1 = jnp.maximum(acc + b1t_ref[...], 0.0)                       # (28, 224)

    # ---- maxpool 2x2 stride 2 : (14, 14*8) ---------------------------------
    ph = jnp.maximum(dot(y1, ew1_ref[0]), dot(y1, ew1_ref[1]))      # (28, 112)
    z1 = jnp.maximum(dot(sh1_ref[0], ph), dot(sh1_ref[1], ph))      # (14, 112)

    # ---- conv2 (3x3 valid, 8->8) + bias + relu : (12, 12*8) ----------------
    oh2 = z1.shape[0] - K + 1                # 12
    acc = dot(z1[0:oh2, :], c2_ref[0])
    for kh in range(1, K):
        acc = acc + dot(z1[kh:kh + oh2, :], c2_ref[kh])
    y2 = jnp.maximum(acc + b2t_ref[...], 0.0)                       # (12, 96)

    # ---- maxpool 2x2 stride 2 : (6, 6*8) -----------------------------------
    ph2 = jnp.maximum(dot(y2, ew2_ref[0]), dot(y2, ew2_ref[1]))     # (12, 48)
    z2 = jnp.maximum(dot(sh2_ref[0], ph2), dot(sh2_ref[1], ph2))    # (6, 48)

    # ---- fc1 + relu : (1, 32) ----------------------------------------------
    rows, feat = z2.shape                    # 6, 48
    h = bf1_ref[...]
    for r in range(rows):
        h = h + dot(z2[r:r + 1, :], w1r_ref[r * feat:(r + 1) * feat, :])
    h = jnp.maximum(h, 0.0)

    # ---- fc2 + log_softmax : (1, 7) ----------------------------------------
    logits = dot(h, w2r_ref[...]) + bf2_ref[...]
    m = jnp.max(logits, axis=-1, keepdims=True)
    lse = m + jnp.log(jnp.sum(jnp.exp(logits - m), axis=-1, keepdims=True))
    o_ref[...] = (logits - lse)[None, :, :].astype(o_ref.dtype)


# ----------------------------- host-side weight packing (done once) ---------

def pack_params(params):
    w1 = np.asarray(params["conv1_w"], np.float32)   # (8, 1, 3, 3)
    b1 = np.asarray(params["conv1_b"], np.float32)   # (8,)
    w2 = np.asarray(params["conv2_w"], np.float32)   # (8, 8, 3, 3)
    b2 = np.asarray(params["conv2_b"], np.float32)   # (8,)
    fw1 = np.asarray(params["fc1_w"], np.float32)    # (32, 288) torch (out, in)
    fb1 = np.asarray(params["fc1_b"], np.float32)    # (32,)
    fw2 = np.asarray(params["fc2_w"], np.float32)    # (7, 32)
    fb2 = np.asarray(params["fc2_b"], np.float32)    # (7,)

    OC1, _, K, _ = w1.shape                          # 8, 3
    OC2, IC2 = w2.shape[0], w2.shape[1]              # 8, 8
    Hin = Win = 30
    OW1 = Win - K + 1                                # 28
    HP1 = OW1 // 2                                   # 14
    OW2 = HP1 - K + 1                                # 12
    HP2 = OW2 // 2                                   # 6

    # conv1 banded weights: (K, Win, OW1*OC1); input column j feeds output ow = j - kw.
    c1 = np.zeros((K, Win, OW1, OC1), np.float32)
    for kh in range(K):
        for kw in range(K):
            for ow in range(OW1):
                c1[kh, ow + kw, ow, :] = w1[:, 0, kh, kw]
    c1 = c1.reshape(K, Win, OW1 * OC1)
    b1t = np.tile(b1, OW1)[None, :]                  # (1, 224)

    # conv2 banded weights: (K, HP1*IC2, OW2*OC2) for channel-interleaved lanes.
    c2 = np.zeros((K, HP1, IC2, OW2, OC2), np.float32)
    for kh in range(K):
        for kw in range(K):
            for ow in range(OW2):
                c2[kh, ow + kw, :, ow, :] = w2[:, :, kh, kw].T   # (ic, oc)
    c2 = c2.reshape(K, HP1 * IC2, OW2 * OC2)
    b2t = np.tile(b2, OW2)[None, :]                  # (1, 96)

    # 2x2 maxpool selection matrices (even/odd column blocks, even/odd rows).
    def pool_mats(wb, c):
        ew = np.zeros((2, c * wb, c * (wb // 2)), np.float32)
        for j in range(wb // 2):
            for ch in range(c):
                ew[0, c * (2 * j) + ch, c * j + ch] = 1.0
                ew[1, c * (2 * j + 1) + ch, c * j + ch] = 1.0
        sh = np.zeros((2, wb // 2, wb), np.float32)
        for i in range(wb // 2):
            sh[0, i, 2 * i] = 1.0
            sh[1, i, 2 * i + 1] = 1.0
        return ew, sh

    ew1, sh1 = pool_mats(OW1, OC1)   # (2,224,112), (2,14,28)
    ew2, sh2 = pool_mats(OW2, OC2)   # (2,96,48),   (2,6,12)

    # fc1: torch feature order (c, h, w) -> kernel order (h, w, c)
    w1r = fw1.reshape(-1, OC2, HP2, HP2).transpose(2, 3, 1, 0)
    w1r = w1r.reshape(HP2 * HP2 * OC2, -1)           # (288, 32)
    bf1 = fb1[None, :]                               # (1, 32)
    w2r = fw2.T                                      # (32, 7)
    bf2 = fb2[None, :]                               # (1, 7)

    packed = dict(c1=c1, b1t=b1t, c2=c2, b2t=b2t, ew1=ew1, sh1=sh1,
                  ew2=ew2, sh2=sh2, w1r=w1r, bf1=bf1, w2r=w2r, bf2=bf2)
    return {k: jnp.asarray(v, jnp.float32) for k, v in packed.items()}


# ----------------------------- forward (single pallas_call) -----------------

def _replicated_spec(a):
    zeros = (0,) * a.ndim
    return pl.BlockSpec(a.shape, lambda i, _z=zeros: _z)


def cnn_forward(x_nchw, prep):
    N = x_nchw.shape[0]
    Hin, Win = x_nchw.shape[2], x_nchw.shape[3]
    x = x_nchw.reshape(N, Hin, Win).astype(jnp.float32)   # squeeze C=1

    order = ("c1", "b1t", "c2", "b2t", "ew1", "sh1", "ew2", "sh2",
             "w1r", "bf1", "w2r", "bf2")
    weights = [prep[k] for k in order]

    in_specs = [pl.BlockSpec((1, Hin, Win), lambda i: (i, 0, 0))]
    in_specs += [_replicated_spec(w) for w in weights]

    n_cls = prep["w2r"].shape[1]
    out = pl.pallas_call(
        fused_cnn_kernel,
        out_shape=jax.ShapeDtypeStruct((N, 1, n_cls), jnp.float32),
        grid=(N,),
        in_specs=in_specs,
        out_specs=pl.BlockSpec((1, 1, n_cls), lambda i: (i, 0, 0)),
        compiler_params=pltpu.CompilerParams(dimension_semantics=("parallel",)),
    )(x, *weights)
    return out.reshape(N, n_cls)


# ----------------------------- pure-JAX reference (for checking) ------------

def cnn_forward_reference(x_nchw, params):
    x = x_nchw.astype(jnp.float32)

    def conv(v, w, b):
        y = jax.lax.conv_general_dilated(
            v, w, window_strides=(1, 1), padding="VALID",
            dimension_numbers=("NCHW", "OIHW", "NCHW"))
        return y + b[None, :, None, None]

    def pool(v):
        return jax.lax.reduce_window(v, -jnp.inf, jax.lax.max,
                                     (1, 1, 2, 2), (1, 1, 2, 2), "VALID")

    y = pool(jax.nn.relu(conv(x, params["conv1_w"], params["conv1_b"])))
    y = pool(jax.nn.relu(conv(y, params["conv2_w"], params["conv2_b"])))
    flat = y.reshape(y.shape[0], -1)
    h = jax.nn.relu(flat @ params["fc1_w"].T + params["fc1_b"])
    logits = h @ params["fc2_w"].T + params["fc2_b"]
    return jax.nn.log_softmax(logits, axis=-1)


# ----------------------------- params ---------------------------------------

def init_params(key):
    ks = jax.random.split(key, 8)
    scale = 0.1
    return {
        "conv1_w": jax.random.normal(ks[0], (8, 1, 3, 3), jnp.float32) * scale,
        "conv1_b": jax.random.normal(ks[1], (8,), jnp.float32) * scale,
        "conv2_w": jax.random.normal(ks[2], (8, 8, 3, 3), jnp.float32) * scale,
        "conv2_b": jax.random.normal(ks[3], (8,), jnp.float32) * scale,
        "fc1_w": jax.random.normal(ks[4], (32, 288), jnp.float32) * scale,  # (out, in)
        "fc1_b": jax.random.normal(ks[5], (32,), jnp.float32) * scale,
        "fc2_w": jax.random.normal(ks[6], (7, 32), jnp.float32) * scale,
        "fc2_b": jax.random.normal(ks[7], (7,), jnp.float32) * scale,
    }


# ----------------------------- main ------------------------------------------

if __name__ == "__main__":
    key = jax.random.PRNGKey(0)
    k_params, k_x = jax.random.split(key)
    params = init_params(k_params)
    prep = pack_params(params)          # one-time host-side weight repacking

    # input consistent with config['input_shape'] = (1, 30, 30), batch = 2
    x = jax.random.normal(k_x, (2, 1, 30, 30), jnp.float32)

    fwd = jax.jit(cnn_forward)
    out = jax.block_until_ready(fwd(x, prep))

    # correctness checks against a pure-JAX reference of the torch module
    ref = cnn_forward_reference(x, params)

    assert out.shape == (2, 7)
    assert bool(jnp.all(jnp.isfinite(out)))
    probs = jnp.exp(out)
    assert bool(jnp.allclose(jnp.sum(probs, axis=1), 1.0, atol=1e-4))
    assert bool(jnp.allclose(out, ref, atol=1e-2, rtol=1e-2))

    print("KERNEL_OK")
</pallas_src>

<mosaic_0001>
module attributes {stable_mosaic.version = 11 : i64} {
  func.func @fused_cnn_kernel(%arg0: i32, %arg1: memref<1x30x30xf32, #tpu.memory_space<vmem>>, %arg2: memref<3x30x224xf32, #tpu.memory_space<vmem>>, %arg3: memref<1x224xf32, #tpu.memory_space<vmem>>, %arg4: memref<3x112x96xf32, #tpu.memory_space<vmem>>, %arg5: memref<1x96xf32, #tpu.memory_space<vmem>>, %arg6: memref<2x224x112xf32, #tpu.memory_space<vmem>>, %arg7: memref<2x14x28xf32, #tpu.memory_space<vmem>>, %arg8: memref<2x96x48xf32, #tpu.memory_space<vmem>>, %arg9: memref<2x6x12xf32, #tpu.memory_space<vmem>>, %arg10: memref<288x32xf32, #tpu.memory_space<vmem>>, %arg11: memref<1x32xf32, #tpu.memory_space<vmem>>, %arg12: memref<32x7xf32, #tpu.memory_space<vmem>>, %arg13: memref<1x7xf32, #tpu.memory_space<vmem>>, %arg14: memref<1x1x7xf32, #tpu.memory_space<vmem>>) attributes {dimension_semantics = [#tpu.dimension_semantics<parallel>], iteration_bounds = array<i64: 2>, scalar_prefetch = 0 : i64, scratch_operands = 0 : i64, tpu.core_type = #tpu.core_type<tc>, window_params = [{transform_indices = @transform_0, window_bounds = array<i64: 1, 30, 30>}, {pipeline_mode = #tpu.pipeline_mode<synchronous>, transform_indices = @transform_1, window_bounds = array<i64: 3, 30, 224>}, {pipeline_mode = #tpu.pipeline_mode<synchronous>, transform_indices = @transform_2, window_bounds = array<i64: 1, 224>}, {pipeline_mode = #tpu.pipeline_mode<synchronous>, transform_indices = @transform_3, window_bounds = array<i64: 3, 112, 96>}, {pipeline_mode = #tpu.pipeline_mode<synchronous>, transform_indices = @transform_4, window_bounds = array<i64: 1, 96>}, {pipeline_mode = #tpu.pipeline_mode<synchronous>, transform_indices = @transform_5, window_bounds = array<i64: 2, 224, 112>}, {pipeline_mode = #tpu.pipeline_mode<synchronous>, transform_indices = @transform_6, window_bounds = array<i64: 2, 14, 28>}, {pipeline_mode = #tpu.pipeline_mode<synchronous>, transform_indices = @transform_7, window_bounds = array<i64: 2, 96, 48>}, {pipeline_mode = #tpu.pipeline_mode<synchronous>, transform_indices = @transform_8, window_bounds = array<i64: 2, 6, 12>}, {pipeline_mode = #tpu.pipeline_mode<synchronous>, transform_indices = @transform_9, window_bounds = array<i64: 288, 32>}, {pipeline_mode = #tpu.pipeline_mode<synchronous>, transform_indices = @transform_10, window_bounds = array<i64: 1, 32>}, {pipeline_mode = #tpu.pipeline_mode<synchronous>, transform_indices = @transform_11, window_bounds = array<i64: 32, 7>}, {pipeline_mode = #tpu.pipeline_mode<synchronous>, transform_indices = @transform_12, window_bounds = array<i64: 1, 7>}, {transform_indices = @transform_13, window_bounds = array<i64: 1, 1, 7>}]} {
    %c0 = arith.constant 0 : index
    %c0_0 = arith.constant 0 : index
    %c0_1 = arith.constant 0 : index
    %0 = vector.load %arg1[%c0, %c0_0, %c0_1] : memref<1x30x30xf32, #tpu.memory_space<vmem>>, vector<1x30x30xf32>
    %1 = vector.shape_cast %0 : vector<1x30x30xf32> to vector<30x30xf32>
    %2 = vector.extract_strided_slice %1 {offsets = [0, 0], sizes = [28, 30], strides = [1, 1]} : vector<30x30xf32> to vector<28x30xf32>
    %c0_2 = arith.constant 0 : index
    %c0_3 = arith.constant 0 : index
    %c0_4 = arith.constant 0 : index
    %3 = vector.load %arg2[%c0_2, %c0_3, %c0_4] : memref<3x30x224xf32, #tpu.memory_space<vmem>>, vector<1x30x224xf32>
    %4 = vector.shape_cast %3 : vector<1x30x224xf32> to vector<30x224xf32>
    %cst = arith.constant dense<0.000000e+00> : vector<28x224xf32>
    %5 = tpu.matmul %2, %4, %cst {dimension_numbers = #tpu.dot_dimension_numbers<[1], [0], [0], [1], [0, 0, 1, 1], [], []>} : vector<28x30xf32>, vector<30x224xf32>, vector<28x224xf32> -> vector<28x224xf32>
    %6 = vector.extract_strided_slice %1 {offsets = [1, 0], sizes = [28, 30], strides = [1, 1]} : vector<30x30xf32> to vector<28x30xf32>
    %c1 = arith.constant 1 : index
    %c0_5 = arith.constant 0 : index
    %c0_6 = arith.constant 0 : index
    %7 = vector.load %arg2[%c1, %c0_5, %c0_6] : memref<3x30x224xf32, #tpu.memory_space<vmem>>, vector<1x30x224xf32>
    %8 = vector.shape_cast %7 : vector<1x30x224xf32> to vector<30x224xf32>
    %cst_7 = arith.constant dense<0.000000e+00> : vector<28x224xf32>
    %9 = tpu.matmul %6, %8, %cst_7 {dimension_numbers = #tpu.dot_dimension_numbers<[1], [0], [0], [1], [0, 0, 1, 1], [], []>} : vector<28x30xf32>, vector<30x224xf32>, vector<28x224xf32> -> vector<28x224xf32>
    %10 = arith.addf %5, %9 : vector<28x224xf32>
    %11 = vector.extract_strided_slice %1 {offsets = [2, 0], sizes = [28, 30], strides = [1, 1]} : vector<30x30xf32> to vector<28x30xf32>
    %c2 = arith.constant 2 : index
    %c0_8 = arith.constant 0 : index
    %c0_9 = arith.constant 0 : index
    %12 = vector.load %arg2[%c2, %c0_8, %c0_9] : memref<3x30x224xf32, #tpu.memory_space<vmem>>, vector<1x30x224xf32>
    %13 = vector.shape_cast %12 : vector<1x30x224xf32> to vector<30x224xf32>
    %cst_10 = arith.constant dense<0.000000e+00> : vector<28x224xf32>
    %14 = tpu.matmul %11, %13, %cst_10 {dimension_numbers = #tpu.dot_dimension_numbers<[1], [0], [0], [1], [0, 0, 1, 1], [], []>} : vector<28x30xf32>, vector<30x224xf32>, vector<28x224xf32> -> vector<28x224xf32>
    %15 = arith.addf %10, %14 : vector<28x224xf32>
    %c0_11 = arith.constant 0 : index
    %c0_12 = arith.constant 0 : index
    %16 = vector.load %arg3[%c0_11, %c0_12] : memref<1x224xf32, #tpu.memory_space<vmem>>, vector<1x224xf32>
    %17 = vector.broadcast %16 : vector<1x224xf32> to vector<28x224xf32>
    %18 = arith.addf %15, %17 : vector<28x224xf32>
    %cst_13 = arith.constant 0.000000e+00 : f32
    %19 = vector.broadcast %cst_13 : f32 to vector<28x224xf32>
    %20 = arith.maximumf %18, %19 : vector<28x224xf32>
    %c0_14 = arith.constant 0 : index
    %c0_15 = arith.constant 0 : index
    %c0_16 = arith.constant 0 : index
    %21 = vector.load %arg6[%c0_14, %c0_15, %c0_16] : memref<2x224x112xf32, #tpu.memory_space<vmem>>, vector<1x224x112xf32>
    %22 = vector.shape_cast %21 : vector<1x224x112xf32> to vector<224x112xf32>
    %cst_17 = arith.constant dense<0.000000e+00> : vector<28x112xf32>
    %23 = tpu.matmul %20, %22, %cst_17 {dimension_numbers = #tpu.dot_dimension_numbers<[1], [0], [0], [1], [0, 0, 1, 1], [], []>} : vector<28x224xf32>, vector<224x112xf32>, vector<28x112xf32> -> vector<28x112xf32>
    %c1_18 = arith.constant 1 : index
    %c0_19 = arith.constant 0 : index
    %c0_20 = arith.constant 0 : index
    %24 = vector.load %arg6[%c1_18, %c0_19, %c0_20] : memref<2x224x112xf32, #tpu.memory_space<vmem>>, vector<1x224x112xf32>
    %25 = vector.shape_cast %24 : vector<1x224x112xf32> to vector<224x112xf32>
    %cst_21 = arith.constant dense<0.000000e+00> : vector<28x112xf32>
    %26 = tpu.matmul %20, %25, %cst_21 {dimension_numbers = #tpu.dot_dimension_numbers<[1], [0], [0], [1], [0, 0, 1, 1], [], []>} : vector<28x224xf32>, vector<224x112xf32>, vector<28x112xf32> -> vector<28x112xf32>
    %27 = arith.maximumf %23, %26 : vector<28x112xf32>
    %c0_22 = arith.constant 0 : index
    %c0_23 = arith.constant 0 : index
    %c0_24 = arith.constant 0 : index
    %28 = vector.load %arg7[%c0_22, %c0_23, %c0_24] : memref<2x14x28xf32, #tpu.memory_space<vmem>>, vector<1x14x28xf32>
    %29 = vector.shape_cast %28 : vector<1x14x28xf32> to vector<14x28xf32>
    %cst_25 = arith.constant dense<0.000000e+00> : vector<14x112xf32>
    %30 = tpu.matmul %29, %27, %cst_25 {dimension_numbers = #tpu.dot_dimension_numbers<[1], [0], [0], [1], [0, 0, 1, 1], [], []>} : vector<14x28xf32>, vector<28x112xf32>, vector<14x112xf32> -> vector<14x112xf32>
    %c1_26 = arith.constant 1 : index
    %c0_27 = arith.constant 0 : index
    %c0_28 = arith.constant 0 : index
    %31 = vector.load %arg7[%c1_26, %c0_27, %c0_28] : memref<2x14x28xf32, #tpu.memory_space<vmem>>, vector<1x14x28xf32>
    %32 = vector.shape_cast %31 : vector<1x14x28xf32> to vector<14x28xf32>
    %cst_29 = arith.constant dense<0.000000e+00> : vector<14x112xf32>
    %33 = tpu.matmul %32, %27, %cst_29 {dimension_numbers = #tpu.dot_dimension_numbers<[1], [0], [0], [1], [0, 0, 1, 1], [], []>} : vector<14x28xf32>, vector<28x112xf32>, vector<14x112xf32> -> vector<14x112xf32>
    %34 = arith.maximumf %30, %33 : vector<14x112xf32>
    %35 = vector.extract_strided_slice %34 {offsets = [0, 0], sizes = [12, 112], strides = [1, 1]} : vector<14x112xf32> to vector<12x112xf32>
    %c0_30 = arith.constant 0 : index
    %c0_31 = arith.constant 0 : index
    %c0_32 = arith.constant 0 : index
    %36 = vector.load %arg4[%c0_30, %c0_31, %c0_32] : memref<3x112x96xf32, #tpu.memory_space<vmem>>, vector<1x112x96xf32>
    %37 = vector.shape_cast %36 : vector<1x112x96xf32> to vector<112x96xf32>
    %cst_33 = arith.constant dense<0.000000e+00> : vector<12x96xf32>
    %38 = tpu.matmul %35, %37, %cst_33 {dimension_numbers = #tpu.dot_dimension_numbers<[1], [0], [0], [1], [0, 0, 1, 1], [], []>} : vector<12x112xf32>, vector<112x96xf32>, vector<12x96xf32> -> vector<12x96xf32>
    %39 = vector.extract_strided_slice %34 {offsets = [1, 0], sizes = [12, 112], strides = [1, 1]} : vector<14x112xf32> to vector<12x112xf32>
    %c1_34 = arith.constant 1 : index
    %c0_35 = arith.constant 0 : index
    %c0_36 = arith.constant 0 : index
    %40 = vector.load %arg4[%c1_34, %c0_35, %c0_36] : memref<3x112x96xf32, #tpu.memory_space<vmem>>, vector<1x112x96xf32>
    %41 = vector.shape_cast %40 : vector<1x112x96xf32> to vector<112x96xf32>
    %cst_37 = arith.constant dense<0.000000e+00> : vector<12x96xf32>
    %42 = tpu.matmul %39, %41, %cst_37 {dimension_numbers = #tpu.dot_dimension_numbers<[1], [0], [0], [1], [0, 0, 1, 1], [], []>} : vector<12x112xf32>, vector<112x96xf32>, vector<12x96xf32> -> vector<12x96xf32>
    %43 = arith.addf %38, %42 : vector<12x96xf32>
    %44 = vector.extract_strided_slice %34 {offsets = [2, 0], sizes = [12, 112], strides = [1, 1]} : vector<14x112xf32> to vector<12x112xf32>
    %c2_38 = arith.constant 2 : index
    %c0_39 = arith.constant 0 : index
    %c0_40 = arith.constant 0 : index
    %45 = vector.load %arg4[%c2_38, %c0_39, %c0_40] : memref<3x112x96xf32, #tpu.memory_space<vmem>>, vector<1x112x96xf32>
    %46 = vector.shape_cast %45 : vector<1x112x96xf32> to vector<112x96xf32>
    %cst_41 = arith.constant dense<0.000000e+00> : vector<12x96xf32>
    %47 = tpu.matmul %44, %46, %cst_41 {dimension_numbers = #tpu.dot_dimension_numbers<[1], [0], [0], [1], [0, 0, 1, 1], [], []>} : vector<12x112xf32>, vector<112x96xf32>, vector<12x96xf32> -> vector<12x96xf32>
    %48 = arith.addf %43, %47 : vector<12x96xf32>
    %c0_42 = arith.constant 0 : index
    %c0_43 = arith.constant 0 : index
    %49 = vector.load %arg5[%c0_42, %c0_43] : memref<1x96xf32, #tpu.memory_space<vmem>>, vector<1x96xf32>
    %50 = vector.broadcast %49 : vector<1x96xf32> to vector<12x96xf32>
    %51 = arith.addf %48, %50 : vector<12x96xf32>
    %cst_44 = arith.constant 0.000000e+00 : f32
    %52 = vector.broadcast %cst_44 : f32 to vector<12x96xf32>
    %53 = arith.maximumf %51, %52 : vector<12x96xf32>
    %c0_45 = arith.constant 0 : index
    %c0_46 = arith.constant 0 : index
    %c0_47 = arith.constant 0 : index
    %54 = vector.load %arg8[%c0_45, %c0_46, %c0_47] : memref<2x96x48xf32, #tpu.memory_space<vmem>>, vector<1x96x48xf32>
    %55 = vector.shape_cast %54 : vector<1x96x48xf32> to vector<96x48xf32>
    %cst_48 = arith.constant dense<0.000000e+00> : vector<12x48xf32>
    %56 = tpu.matmul %53, %55, %cst_48 {dimension_numbers = #tpu.dot_dimension_numbers<[1], [0], [0], [1], [0, 0, 1, 1], [], []>} : vector<12x96xf32>, vector<96x48xf32>, vector<12x48xf32> -> vector<12x48xf32>
    %c1_49 = arith.constant 1 : index
    %c0_50 = arith.constant 0 : index
    %c0_51 = arith.constant 0 : index
    %57 = vector.load %arg8[%c1_49, %c0_50, %c0_51] : memref<2x96x48xf32, #tpu.memory_space<vmem>>, vector<1x96x48xf32>
    %58 = vector.shape_cast %57 : vector<1x96x48xf32> to vector<96x48xf32>
    %cst_52 = arith.constant dense<0.000000e+00> : vector<12x48xf32>
    %59 = tpu.matmul %53, %58, %cst_52 {dimension_numbers = #tpu.dot_dimension_numbers<[1], [0], [0], [1], [0, 0, 1, 1], [], []>} : vector<12x96xf32>, vector<96x48xf32>, vector<12x48xf32> -> vector<12x48xf32>
    %60 = arith.maximumf %56, %59 : vector<12x48xf32>
    %c0_53 = arith.constant 0 : index
    %c0_54 = arith.constant 0 : index
    %c0_55 = arith.constant 0 : index
    %61 = vector.load %arg9[%c0_53, %c0_54, %c0_55] : memref<2x6x12xf32, #tpu.memory_space<vmem>>, vector<1x6x12xf32>
    %62 = vector.shape_cast %61 : vector<1x6x12xf32> to vector<6x12xf32>
    %cst_56 = arith.constant dense<0.000000e+00> : vector<6x48xf32>
    %63 = tpu.matmul %62, %60, %cst_56 {dimension_numbers = #tpu.dot_dimension_numbers<[1], [0], [0], [1], [0, 0, 1, 1], [], []>} : vector<6x12xf32>, vector<12x48xf32>, vector<6x48xf32> -> vector<6x48xf32>
    %c1_57 = arith.constant 1 : index
    %c0_58 = arith.constant 0 : index
    %c0_59 = arith.constant 0 : index
    %64 = vector.load %arg9[%c1_57, %c0_58, %c0_59] : memref<2x6x12xf32, #tpu.memory_space<vmem>>, vector<1x6x12xf32>
    %65 = vector.shape_cast %64 : vector<1x6x12xf32> to vector<6x12xf32>
    %cst_60 = arith.constant dense<0.000000e+00> : vector<6x48xf32>
    %66 = tpu.matmul %65, %60, %cst_60 {dimension_numbers = #tpu.dot_dimension_numbers<[1], [0], [0], [1], [0, 0, 1, 1], [], []>} : vector<6x12xf32>, vector<12x48xf32>, vector<6x48xf32> -> vector<6x48xf32>
    %67 = arith.maximumf %63, %66 : vector<6x48xf32>
    %c0_61 = arith.constant 0 : index
    %c0_62 = arith.constant 0 : index
    %68 = vector.load %arg11[%c0_61, %c0_62] : memref<1x32xf32, #tpu.memory_space<vmem>>, vector<1x32xf32>
    %69 = vector.extract_strided_slice %67 {offsets = [0, 0], sizes = [1, 48], strides = [1, 1]} : vector<6x48xf32> to vector<1x48xf32>
    %c0_63 = arith.constant 0 : index
    %c0_64 = arith.constant 0 : index
    %70 = vector.load %arg10[%c0_63, %c0_64] : memref<288x32xf32, #tpu.memory_space<vmem>>, vector<48x32xf32>
    %cst_65 = arith.constant dense<0.000000e+00> : vector<1x32xf32>
    %71 = tpu.matmul %69, %70, %cst_65 {dimension_numbers = #tpu.dot_dimension_numbers<[1], [0], [0], [1], [0, 0, 1, 1], [], []>} : vector<1x48xf32>, vector<48x32xf32>, vector<1x32xf32> -> vector<1x32xf32>
    %72 = arith.addf %68, %71 : vector<1x32xf32>
    %73 = vector.extract_strided_slice %67 {offsets = [1, 0], sizes = [1, 48], strides = [1, 1]} : vector<6x48xf32> to vector<1x48xf32>
    %c48 = arith.constant 48 : index
    %c0_66 = arith.constant 0 : index
    %74 = vector.load %arg10[%c48, %c0_66] : memref<288x32xf32, #tpu.memory_space<vmem>>, vector<48x32xf32>
    %cst_67 = arith.constant dense<0.000000e+00> : vector<1x32xf32>
    %75 = tpu.matmul %73, %74, %cst_67 {dimension_numbers = #tpu.dot_dimension_numbers<[1], [0], [0], [1], [0, 0, 1, 1], [], []>} : vector<1x48xf32>, vector<48x32xf32>, vector<1x32xf32> -> vector<1x32xf32>
    %76 = arith.addf %72, %75 : vector<1x32xf32>
    %77 = vector.extract_strided_slice %67 {offsets = [2, 0], sizes = [1, 48], strides = [1, 1]} : vector<6x48xf32> to vector<1x48xf32>
    %c96 = arith.constant 96 : index
    %c0_68 = arith.constant 0 : index
    %78 = vector.load %arg10[%c96, %c0_68] : memref<288x32xf32, #tpu.memory_space<vmem>>, vector<48x32xf32>
    %cst_69 = arith.constant dense<0.000000e+00> : vector<1x32xf32>
    %79 = tpu.matmul %77, %78, %cst_69 {dimension_numbers = #tpu.dot_dimension_numbers<[1], [0], [0], [1], [0, 0, 1, 1], [], []>} : vector<1x48xf32>, vector<48x32xf32>, vector<1x32xf32> -> vector<1x32xf32>
    %80 = arith.addf %76, %79 : vector<1x32xf32>
    %81 = vector.extract_strided_slice %67 {offsets = [3, 0], sizes = [1, 48], strides = [1, 1]} : vector<6x48xf32> to vector<1x48xf32>
    %c144 = arith.constant 144 : index
    %c0_70 = arith.constant 0 : index
    %82 = vector.load %arg10[%c144, %c0_70] : memref<288x32xf32, #tpu.memory_space<vmem>>, vector<48x32xf32>
    %cst_71 = arith.constant dense<0.000000e+00> : vector<1x32xf32>
    %83 = tpu.matmul %81, %82, %cst_71 {dimension_numbers = #tpu.dot_dimension_numbers<[1], [0], [0], [1], [0, 0, 1, 1], [], []>} : vector<1x48xf32>, vector<48x32xf32>, vector<1x32xf32> -> vector<1x32xf32>
    %84 = arith.addf %80, %83 : vector<1x32xf32>
    %85 = vector.extract_strided_slice %67 {offsets = [4, 0], sizes = [1, 48], strides = [1, 1]} : vector<6x48xf32> to vector<1x48xf32>
    %c192 = arith.constant 192 : index
    %c0_72 = arith.constant 0 : index
    %86 = vector.load %arg10[%c192, %c0_72] : memref<288x32xf32, #tpu.memory_space<vmem>>, vector<48x32xf32>
    %cst_73 = arith.constant dense<0.000000e+00> : vector<1x32xf32>
    %87 = tpu.matmul %85, %86, %cst_73 {dimension_numbers = #tpu.dot_dimension_numbers<[1], [0], [0], [1], [0, 0, 1, 1], [], []>} : vector<1x48xf32>, vector<48x32xf32>, vector<1x32xf32> -> vector<1x32xf32>
    %88 = arith.addf %84, %87 : vector<1x32xf32>
    %89 = vector.extract_strided_slice %67 {offsets = [5, 0], sizes = [1, 48], strides = [1, 1]} : vector<6x48xf32> to vector<1x48xf32>
    %c240 = arith.constant 240 : index
    %c0_74 = arith.constant 0 : index
    %90 = vector.load %arg10[%c240, %c0_74] : memref<288x32xf32, #tpu.memory_space<vmem>>, vector<48x32xf32>
    %cst_75 = arith.constant dense<0.000000e+00> : vector<1x32xf32>
    %91 = tpu.matmul %89, %90, %cst_75 {dimension_numbers = #tpu.dot_dimension_numbers<[1], [0], [0], [1], [0, 0, 1, 1], [], []>} : vector<1x48xf32>, vector<48x32xf32>, vector<1x32xf32> -> vector<1x32xf32>
    %92 = arith.addf %88, %91 : vector<1x32xf32>
    %cst_76 = arith.constant 0.000000e+00 : f32
    %93 = vector.broadcast %cst_76 : f32 to vector<1x32xf32>
    %94 = arith.maximumf %92, %93 : vector<1x32xf32>
    %c0_77 = arith.constant 0 : index
    %c0_78 = arith.constant 0 : index
    %95 = vector.load %arg12[%c0_77, %c0_78] : memref<32x7xf32, #tpu.memory_space<vmem>>, vector<32x7xf32>
    %cst_79 = arith.constant dense<0.000000e+00> : vector<1x7xf32>
    %96 = tpu.matmul %94, %95, %cst_79 {dimension_numbers = #tpu.dot_dimension_numbers<[1], [0], [0], [1], [0, 0, 1, 1], [], []>} : vector<1x32xf32>, vector<32x7xf32>, vector<1x7xf32> -> vector<1x7xf32>
    %c0_80 = arith.constant 0 : index
    %c0_81 = arith.constant 0 : index
    %97 = vector.load %arg13[%c0_80, %c0_81] : memref<1x7xf32, #tpu.memory_space<vmem>>, vector<1x7xf32>
    %98 = arith.addf %96, %97 : vector<1x7xf32>
    %cst_82 = arith.constant dense<0xFF800000> : vector<1xf32>
    %99 = vector.multi_reduction <maximumf>, %98, %cst_82 [1] : vector<1x7xf32> to vector<1xf32>
    %100 = vector.shape_cast %99 : vector<1xf32> to vector<1x1xf32>
    %101 = vector.broadcast %100 : vector<1x1xf32> to vector<1x7xf32>
    %102 = arith.subf %98, %101 : vector<1x7xf32>
    %103 = math.exp %102 : vector<1x7xf32>
    %cst_83 = arith.constant dense<0.000000e+00> : vector<1xf32>
    %104 = vector.multi_reduction <add>, %103, %cst_83 [1] : vector<1x7xf32> to vector<1xf32>
    %105 = vector.shape_cast %104 : vector<1xf32> to vector<1x1xf32>
    %106 = math.log %105 : vector<1x1xf32>
    %107 = arith.addf %100, %106 : vector<1x1xf32>
    %108 = vector.broadcast %107 : vector<1x1xf32> to vector<1x7xf32>
    %109 = arith.subf %98, %108 : vector<1x7xf32>
    %110 = vector.shape_cast %109 : vector<1x7xf32> to vector<1x1x7xf32>
    %c0_84 = arith.constant 0 : index
    %c0_85 = arith.constant 0 : index
    %c0_86 = arith.constant 0 : index
    %111 = vector.load %arg14[%c0_84, %c0_85, %c0_86] : memref<1x1x7xf32, #tpu.memory_space<vmem>>, vector<1x1x7xf32>
    tpu.vector_store %arg14[%c0_84, %c0_85, %c0_86], %110 {strides = array<i32>} : memref<1x1x7xf32, #tpu.memory_space<vmem>>, vector<1x1x7xf32>,
    return
  }
  func.func @transform_0(%arg0: i32) -> (i32, i32, i32) {
    %c0_i32 = arith.constant 0 : i32
    %c0_i32_0 = arith.constant 0 : i32
    %c0_i32_1 = arith.constant 0 : i32
    return %arg0, %c0_i32, %c0_i32_0 : i32, i32, i32
  }
  func.func @transform_1(%arg0: i32) -> (i32, i32, i32) {
    %c0_i32 = arith.constant 0 : i32
    %c0_i32_0 = arith.constant 0 : i32
    %c0_i32_1 = arith.constant 0 : i32
    %c0_i32_2 = arith.constant 0 : i32
    return %c0_i32, %c0_i32_0, %c0_i32_1 : i32, i32, i32
  }
  func.func @transform_2(%arg0: i32) -> (i32, i32) {
    %c0_i32 = arith.constant 0 : i32
    %c0_i32_0 = arith.constant 0 : i32
    %c0_i32_1 = arith.constant 0 : i32
    return %c0_i32, %c0_i32_0 : i32, i32
  }
  func.func @transform_3(%arg0: i32) -> (i32, i32, i32) {
    %c0_i32 = arith.constant 0 : i32
    %c0_i32_0 = arith.constant 0 : i32
    %c0_i32_1 = arith.constant 0 : i32
    %c0_i32_2 = arith.constant 0 : i32
    return %c0_i32, %c0_i32_0, %c0_i32_1 : i32, i32, i32
  }
  func.func @transform_4(%arg0: i32) -> (i32, i32) {
    %c0_i32 = arith.constant 0 : i32
    %c0_i32_0 = arith.constant 0 : i32
    %c0_i32_1 = arith.constant 0 : i32
    return %c0_i32, %c0_i32_0 : i32, i32
  }
  func.func @transform_5(%arg0: i32) -> (i32, i32, i32) {
    %c0_i32 = arith.constant 0 : i32
    %c0_i32_0 = arith.constant 0 : i32
    %c0_i32_1 = arith.constant 0 : i32
    %c0_i32_2 = arith.constant 0 : i32
    return %c0_i32, %c0_i32_0, %c0_i32_1 : i32, i32, i32
  }
  func.func @transform_6(%arg0: i32) -> (i32, i32, i32) {
    %c0_i32 = arith.constant 0 : i32
    %c0_i32_0 = arith.constant 0 : i32
    %c0_i32_1 = arith.constant 0 : i32
    %c0_i32_2 = arith.constant 0 : i32
    return %c0_i32, %c0_i32_0, %c0_i32_1 : i32, i32, i32
  }
  func.func @transform_7(%arg0: i32) -> (i32, i32, i32) {
    %c0_i32 = arith.constant 0 : i32
    %c0_i32_0 = arith.constant 0 : i32
    %c0_i32_1 = arith.constant 0 : i32
    %c0_i32_2 = arith.constant 0 : i32
    return %c0_i32, %c0_i32_0, %c0_i32_1 : i32, i32, i32
  }
  func.func @transform_8(%arg0: i32) -> (i32, i32, i32) {
    %c0_i32 = arith.constant 0 : i32
    %c0_i32_0 = arith.constant 0 : i32
    %c0_i32_1 = arith.constant 0 : i32
    %c0_i32_2 = arith.constant 0 : i32
    return %c0_i32, %c0_i32_0, %c0_i32_1 : i32, i32, i32
  }
  func.func @transform_9(%arg0: i32) -> (i32, i32) {
    %c0_i32 = arith.constant 0 : i32
    %c0_i32_0 = arith.constant 0 : i32
    %c0_i32_1 = arith.constant 0 : i32
    return %c0_i32, %c0_i32_0 : i32, i32
  }
  func.func @transform_10(%arg0: i32) -> (i32, i32) {
    %c0_i32 = arith.constant 0 : i32
    %c0_i32_0 = arith.constant 0 : i32
    %c0_i32_1 = arith.constant 0 : i32
    return %c0_i32, %c0_i32_0 : i32, i32
  }
  func.func @transform_11(%arg0: i32) -> (i32, i32) {
    %c0_i32 = arith.constant 0 : i32
    %c0_i32_0 = arith.constant 0 : i32
    %c0_i32_1 = arith.constant 0 : i32
    return %c0_i32, %c0_i32_0 : i32, i32
  }
  func.func @transform_12(%arg0: i32) -> (i32, i32) {
    %c0_i32 = arith.constant 0 : i32
    %c0_i32_0 = arith.constant 0 : i32
    %c0_i32_1 = arith.constant 0 : i32
    return %c0_i32, %c0_i32_0 : i32, i32
  }
  func.func @transform_13(%arg0: i32) -> (i32, i32, i32) {
    %c0_i32 = arith.constant 0 : i32
    %c0_i32_0 = arith.constant 0 : i32
    %c0_i32_1 = arith.constant 0 : i32
    return %arg0, %c0_i32, %c0_i32_0 : i32, i32, i32
  }
}

</mosaic_0001>

<bundles_post_ra>
// kernel: cnn_forward.1
= control target key start
LH: loop header
LB: loop body
LE: loop exit
PB: predicated region body
PF: predicated region fallthrough
CT: control target
= control target key end

     0   :  { %18 = vsyncpa [#allocation3], 0  ;;  %s4555_s0 = inlined_call_operand.vmem [shape: f32[2,30,30], index: 0, kind: input, shape index: {}]   ;;  %s4556_s1 = inlined_call_operand.vmem [shape: f32[3,30,224], index: 1, kind: input, shape index: {}]   ;;  %s4557_s2 = inlined_call_operand.vmem [shape: f32[1,224], index: 2, kind: input, shape index: {}]   ;;  %s4558_s3 = inlined_call_operand.vmem [shape: f32[3,112,96], index: 3, kind: input, shape index: {}]   ;;  %s4559_s4 = inlined_call_operand.vmem [shape: f32[1,96], index: 4, kind: input, shape index: {}]   ;;  %s4560_s5 = inlined_call_operand.vmem [shape: f32[2,224,112], index: 5, kind: input, shape index: {}]   ;;  %s4561_s6 = inlined_call_operand.vmem [shape: f32[2,14,28], index: 6, kind: input, shape index: {}]   ;;  %s4562_s7 = inlined_call_operand.vmem [shape: f32[2,96,48], index: 7, kind: input, shape index: {}]   ;;  %s4563_s8 = inlined_call_operand.vmem [shape: f32[2,6,12], index: 8, kind: input, shape index: {}]   ;;  %s4564_s9 = inlined_call_operand.vmem [shape: f32[288,32], index: 9, kind: input, shape index: {}]   ;;  %s4565_s10 = inlined_call_operand.vmem [shape: f32[1,32], index: 10, kind: input, shape index: {}]   ;;  %s4566_s11 = inlined_call_operand.vmem [shape: f32[32,7], index: 11, kind: input, shape index: {}]   ;;  %s4567_s12 = inlined_call_operand.vmem [shape: f32[1,7], index: 12, kind: input, shape index: {}]   ;;  %s4568_s13 = inlined_call_operand.hbm [shape: f32[2,1,7], index: 13, kind: output, shape index: {}]  }
   0x1   :  { %20 = vsyncpa [#allocation3 + $0x1], 0  ;;  %s3664_s25 = smov 0   ;;  %s3666_s26 = smov 0  }
   0x2   :  { %s3668_s27 = smov 0   ;;  %s3670_s28 = smov 0  }
   0x3 LB: > { %4574 = sst [smem:[#allocation5_spill]] %s3575_s25  ;;  %s3685_s29 = sadd.s32 4294967295, %s3587_s28   ;;  %s3587_s28 = sphi %s3670_s28, %s4587_s28   ;;  %s3583_s27 = sphi %s3668_s27, %s4589_s27   ;;  %s3579_s26 = sphi %s3666_s26, %s4591_s26   ;;  %s3575_s25 = sphi %s3664_s25, %s4590_s25  }
   0x4   : > { %4575 = sst [smem:[#allocation6_spill]] %s3583_s27  ;;  %s2537_s30 = sadd.s32 4294967294, %s3587_s28  }
   0x5   : > { %s3689_s14 = sadd.s32 1, %s3587_s28   ;;  %s311_s15 = sadd.s32 1, %s3583_s27 }
   0x6   : > { %4576 = sst [smem:[#allocation7_spill]] %s3689_s14  ;;  %s308_s16 = ssub.s32 %s3587_s28, %s3689_s14 }
   0x7   : > { %p321_p0 = scmp.ne.s32.totalorder %s3583_s27, %s3579_s26  ;;  %p309_p1 = scmp.eq.s32.totalorder %s308_s16, 0 }
   0x8   : > { %p322_p2 = scmp.eq.s32.totalorder %s3685_s29, 1  ;;  %p327_p3 = scmp.ne.s32.totalorder %s3579_s26, %s3575_s25 }
   0x9   : > { %p328_p4 = scmp.eq.s32.totalorder %s2537_s30, 1  ;;  %p2540_p7 = scmp.ge.s32.totalorder %s3587_s28, 1 }
   0xa   : > { %s3700_s17 = scalar_select %p309_p1, %s3583_s27, %s311_s15  }
   0xb   : > { %p3702_p5 = por %p322_p2, %p321_p0  ;;  %p3706_p6 = por %p328_p4, %p327_p3 }
   0xc   : > { %4577 = sst [smem:[#allocation8_spill]] %s3700_s17  ;;  %p390_p8 = scmp.lt.s32.totalorder %s3587_s28, 3 }
   0xd   : > { %s4579_s19 = scalar_select %p3706_p6, 1, 0 }
   0xe   : > { %p391_p9 = pnand %p2540_p7, %p390_p8 }
   0xf   : > { %4580 = sst [smem:[#allocation9_spill]] %s4579_s19  ;;  %v2544_v0 = vld [vmem:[%s4556_s1 + $0x48] sm:$0xff] (!%p391_p9)  ;;  %v2546_v1 = vld [vmem:[%s4556_s1 + $0x58] sm:$0xff] (!%p391_p9)  ;;  %v2543_v2 = vld [vmem:[%s4556_s1 + $0x40] sm:$0xff] (!%p391_p9)  ;;  %vm480_vm0 = vcmask (!%p391_p9), 1045504   ;;  %v3589_v7 = vmov (!%p391_p9), 0.0  }
  0x10   : > { %394 = sbr.rel (%p391_p9) target bundleno = 2274 (0x8e2), region = 72  ;;  %v3113_v3 = vpack.c.bf16 (!%p391_p9), %v2546_v1, %v2544_v0  ;;  %v2545_v4 = vld [vmem:[%s4556_s1 + $0x50] sm:$0xff] (!%p391_p9)  ;;  %v2548_v5 = vld [vmem:[%s4556_s1 + $0x68] sm:$0xff] (!%p391_p9)  ;;  %v2550_v6 = vld [vmem:[%s4556_s1 + $0x78] sm:$0x3f] (!%p391_p9)  ;;  %551 = vmatprep.mubr.f32.mxu0 (!%p391_p9), %v3589_v7  ;;  %p433_p10 = scmp.lt.s32.totalorder (!%p391_p9), %s3685_s29, 1 }
  0x11   : > { %v3115_v8 = vpack.c.bf16 (!%p391_p9), %v2545_v4, %v2543_v2  ;;  %v3117_v9 = vpack.c.bf16 (!%p391_p9), %v2550_v6, %v2548_v5  ;;  %vm3590_vm1 = vmmov (!%p391_p9), 1   ;;  %v2547_v11 = vld [vmem:[%s4556_s1 + $0x60] sm:$0xff] (!%p391_p9)  ;;  %v2549_v12 = vld [vmem:[%s4556_s1 + $0x70] sm:$0x3f] (!%p391_p9)  ;;  %v443_v13 = vld [vmem:[%s4556_s1 + $0x8] sm:$0xff] (!%p391_p9)  ;;  %v3591_v15 = vmov (!%p391_p9), 0.0|0.0  }
  0x12   : > { %vm3734_vm2 = vmpackc.low (!%p391_p9), %vm480_vm0, %vm3590_vm1  ;;  %3114 = vmatprep.subr.bf16.mxu0 (!%p391_p9), %v3113_v3  ;;  %v445_v14 = vld [vmem:[%s4556_s1 + $0x18] sm:$0xff] (!%p391_p9)  ;;  %3143 = vmatprep.subr.bf16.mxu1 (!%p391_p9), %v3591_v15  ;;  %v3120_v16 = vpack.c.bf16 (!%p391_p9), %v2549_v12, %v2547_v11  ;;  %v442_v18 = vld [vmem:[%s4556_s1] sm:$0xff] (!%p391_p9)  ;;  %vm463_vm3 = vcmask (!%p391_p9), 1046528   ;;  %vm471_vm4 = vcmask (!%p391_p9), 244736   ;;  %vm862_vm5 = vcmask (!%p391_p9), 785408   ;;  %s431_s14 = sand.u32 (!%p391_p9), 1, %s3579_s26  }
  0x13   : > { %3116 = vmatpush1.bf16.msra.mxu0 (!%p391_p9), %v3115_v8  ;;  %v3123_v17 = vpack.c.bf16 (!%p391_p9), %v445_v14, %v443_v13  ;;  %v444_v19 = vld [vmem:[%s4556_s1 + $0x10] sm:$0xff] (!%p391_p9)  ;;  %v447_v20 = vld [vmem:[%s4556_s1 + $0x28] sm:$0xff] (!%p391_p9)  ;;  %v449_v21 = vld [vmem:[%s4556_s1 + $0x38] sm:$0x3f] (!%p391_p9)  ;;  %vm1080_vm6 = vcmask (!%p391_p9), 228352   ;;  %vm1087_vm7 = vcmask (!%p391_p9), 1043456  }
  0x14   : > { %3119 = vmatprep.subr.msk.bf16.mxu0 (!%p391_p9), %vm3734_vm2, %v3117_v9  ;;  %v3125_v27 = vpack.c.bf16 (!%p391_p9), %v444_v19, %v442_v18  ;;  %v446_v28 = vld [vmem:[%s4556_s1 + $0x20] sm:$0xff] (!%p391_p9)  ;;  %v3127_v31 = vpack.c.bf16 (!%p391_p9), %v449_v21, %v447_v20  ;;  %v448_v32 = vld [vmem:[%s4556_s1 + $0x30] sm:$0x3f] (!%p391_p9)  ;;  %v2564_v33 = vld [vmem:[%s4556_s1 + $0x88] sm:$0xff] (!%p391_p9)  ;;  %vm1286_vm9 = vcmask (!%p391_p9), 916480   ;;  %vm3592_vm10 = vmmov (!%p391_p9), 0  }
  0x15   : > { %v2566_v35 = vld [vmem:[%s4556_s1 + $0x98] sm:$0xff] (!%p391_p9)  ;;  %v834_v36 = vld [vmem:[%s4560_s5] sm:$0xff] (!%p391_p9)  ;;  %v835_v37 = vld [vmem:[%s4560_s5 + $0x8] sm:$0xff] (!%p391_p9)  ;;  %v3130_v41 = vpack.c.bf16 (!%p391_p9), %v448_v32, %v446_v28  ;;  %vm1739_vm11 = vcmask (!%p391_p9), 97280   ;;  %vm1899_vm12 = vcmask (!%p391_p9), 392192   ;;  %vm2380_vm13 = vcmask (!%p391_p9), 261120  }
  0x16   : > { %v836_v38 = vld [vmem:[%s4560_s5 + $0x10] sm:$0xff] (!%p391_p9)  ;;  %v3144_v42 = vpack.c.bf16 (!%p391_p9), %v835_v37, %v834_v36  ;;  %v837_v43 = vld [vmem:[%s4560_s5 + $0x18] sm:$0xff] (!%p391_p9)  ;;  %v3133_v44 = vpack.c.bf16 (!%p391_p9), %v2566_v35, %v2564_v33  ;;  %v838_v46 = vld [vmem:[%s4560_s5 + $0x20] sm:$0xff] (!%p391_p9)  ;;  %vm2454_vm14 = vcmask (!%p391_p9), 49152   ;;  %s432_s25 = scalar_lea.vmem (!%p391_p9), [#allocation2], %s431_s14  ;;  %s2470_s17 = scalar_lea.sflag (!%p391_p9), [#allocation3], %s431_s14 }
  0x17   : > { %s434_s24 = scalar_select %p433_p10, %s3685_s29, 1  ;;  %3122 = vmatpush1.bf16.msk.msra.mxu0 %vm3734_vm2, %v3120_v16  ;;  %v3147_v45 = vpack.c.bf16 %v837_v43, %v836_v38  ;;  %v839_v47 = vld [vmem:[%s4560_s5 + $0x28] sm:$0xff]  ;;  %v840_v50 = vld [vmem:[%s4560_s5 + $0x30] sm:$0xff]  ;;  %v841_v51 = vld [vmem:[%s4560_s5 + $0x38] sm:$0xff] }
  0x18   : > { %3124 = vmatprep.subr.bf16.mxu0 %v3123_v17  ;;  %3145 = vmatpush1.bf16.msra.mxu1 %v3144_v42  ;;  %v3150_v49 = vpack.c.bf16 %v839_v47, %v838_v46  ;;  %v2563_v52 = vld [vmem:[%s4556_s1 + $0x80] sm:$0xff]  ;;  %v2565_v53 = vld [vmem:[%s4556_s1 + $0x90] sm:$0xff]  ;;  %v2568_v54 = vld [vmem:[%s4556_s1 + $0xa8] sm:$0xff]  ;;  %v3153_v56 = vpack.c.bf16 %v841_v51, %v840_v50  ;;  %s2482_s19 = sshll.u32 %s432_s25, 4  ;;  %s4514_s19 = int_to_ptr.vmem [resolvable:$true] %s2482_s19 }
  0x19   : > { %s2687_s21 = sshll.u32 %s434_s24, 5  ;;  %3146 = vmatprep.subr.bf16.mxu1 %v3591_v15  ;;  %v2570_v55 = vld [vmem:[%s4556_s1 + $0xb8] sm:$0x3f]  ;;  %v842_v57 = vld [vmem:[%s4560_s5 + $0x40] sm:$0xff]  ;;  %v843_v58 = vld [vmem:[%s4560_s5 + $0x48] sm:$0xff]  ;;  %v3135_v59 = vpack.c.bf16 %v2565_v53, %v2563_v52  ;;  %s2684_s24 = sshll.u32 %s3685_s29, 4 }
  0x1a   : > { %s437_s16 = scalar_lea.vmem %s4555_s0, %s2687_s21  ;;  %v3137_v60 = vpack.c.bf16 %v2570_v55, %v2568_v54  ;;  %v2567_v61 = vld [vmem:[%s4556_s1 + $0xa0] sm:$0xff]  ;;  %v2569_v62 = vld [vmem:[%s4556_s1 + $0xb0] sm:$0x3f]  ;;  %v3156_v63 = vpack.c.bf16 %v843_v58, %v842_v57  ;;  %v845_v1 = vld [vmem:[%s4560_s5 + $0x58] sm:$0xff]  ;;  %s4512_s27 = scalar_lea.hbm %s4568_s13, %s2684_s24 }
  0x1b   : > { %v3769_v22 = vld [vmem:[%s437_s16] sm:$0xff]  ;;  %v3771_v23 = vld [vmem:[%s437_s16 + $0x8] sm:$0xff]  ;;  %v3773_v24 = vld [vmem:[%s437_s16 + $0x10] sm:$0xff]  ;;  %v3140_v2 = vpack.c.bf16 %v2569_v62, %v2567_v61  ;;  %s3525_s23 = scalar_lea.vmem %s4514_s19, 16  ;;  %s3593_s29 = smov [#allocation2]  }
  0x1c   : > { %v464_v25 = vrot.slane %v3769_v22, 1  ;;  %v465_v26 = vrot.slane %v3771_v23, 1  ;;  %v467_v29 = vrot.slane %v3773_v24, 1  ;;  %v3783_v30 = vld [vmem:[%s437_s16 + $0x18] sm:$0x3f]  ;;  %3148 = vmatpush1.bf16.msra.mxu1 %v3147_v45  ;;  %v844_v0 = vld [vmem:[%s4560_s5 + $0x50] sm:$0xff]  ;;  %vm4069_vm8 = vmpackc.low %vm1087_vm7, %vm3590_vm1  ;;  %p3526_p11 = scmp.ne.s32.totalorder %s4514_s19, %s3525_s23 }
  0x1d   : > { %v469_v40 = vrot.slane %v3783_v30, 1  ;;  %3149 = vmatprep.subr.bf16.mxu1 %v3591_v15  ;;  %v3159_v3 = vpack.c.bf16 %v845_v1, %v844_v0  ;;  %v846_v4 = vld [vmem:[%s4560_s5 + $0x60] sm:$0xff]  ;;  %v847_v5 = vld [vmem:[%s4560_s5 + $0x68] sm:$0xff]  ;;  %v848_v8 = vld [vmem:[%s4560_s5 + $0x70] sm:$0xff]  ;;  %v688_v10 = vrot.slane %v3769_v22, 2  ;;  %v689_v11 = vrot.slane %v3771_v23, 2 }
  0x1e   : > { %v466_v34 = vsel %vm463_vm3, %v464_v25, %v465_v26  ;;  %v468_v39 = vsel %vm463_vm3, %v465_v26, %v467_v29  ;;  %v3162_v6 = vpack.c.bf16 %v847_v5, %v846_v4  ;;  %v849_v9 = vld [vmem:[%s4560_s5 + $0x78] sm:$0xff]  ;;  %v2581_v12 = vld [vmem:[%s4560_s5 + $0xe0] sm:$0xff]  ;;  %v2582_v13 = vld [vmem:[%s4560_s5 + $0xe8] sm:$0xff]  ;;  %v691_v19 = vrot.slane %v3773_v24, 2  ;;  %p3527_p12 = pnand %p3526_p11, %p3702_p5  ;;  %s3529_s30 = sshll.u32 %s3593_s29, 4  ;;  %s3530_s30 = int_to_ptr.vmem [resolvable:$false] %s3529_s30 }
  0x1f   : > { %2553 = vmatmul.mubr.msk.f32.vlgmr.msra.gmra.mrb[0].mxu0 %vm471_vm4, %v466_v34  ;;  %v470_v48 = vsel %vm463_vm3, %v467_v29, %v469_v40  ;;  %v3165_v14 = vpack.c.bf16 %v849_v9, %v848_v8  ;;  %v850_v16 = vld [vmem:[%s4560_s5 + $0x80] sm:$0xff]  ;;  %v851_v17 = vld [vmem:[%s4560_s5 + $0x88] sm:$0xff]  ;;  %v690_v18 = vsel %vm480_vm0, %v688_v10, %v689_v11  ;;  %v3186_v20 = vpack.c.bf16 %v2582_v13, %v2581_v12  ;;  %v2583_v21 = vld [vmem:[%s4560_s5 + $0xf0] sm:$0xff]  ;;  %s3531_s15 = scalar_lea.vmem %s3530_s30, 32  ;;  %p3532_p0 = scmp.lt.s32.totalorder %s4514_s19, %s3530_s30 }
  0x20   : > { %557 = vmatprep.mubr.f32.mxu0 %v3589_v7  ;;  %3126 = vmatpush1.bf16.msra.mxu0 %v3125_v27  ;;  %v852_v25 = vld [vmem:[%s4560_s5 + $0x90] sm:$0xff]  ;;  %v692_v26 = vsel %vm480_vm0, %v689_v11, %v691_v19  ;;  %v693_v27 = vrot.slane %v3783_v30, 2  ;;  %v2585_v29 = vld [vmem:[%s4560_s5 + $0x100] sm:$0xff]  ;;  %v855_v33 = vld [vmem:[%s4560_s5 + $0xa8] sm:$0xff]  ;;  %p3528_p13 = pneg %p3527_p12  ;;  %p3533_p1 = scmp.lt.s32.totalorder %s3531_s15, %s3525_s23 }
  0x21   : > { %3129 = vmatprep.subr.msk.bf16.mxu0 %vm3734_vm2, %v3127_v31  ;;  %3151 = vmatpush1.bf16.msra.mxu1 %v3150_v49  ;;  %v2586_v31 = vld [vmem:[%s4560_s5 + $0x108] sm:$0xff]  ;;  %v2587_v36 = vld [vmem:[%s4560_s5 + $0x110] sm:$0xff]  ;;  %v2588_v37 = vld [vmem:[%s4560_s5 + $0x118] sm:$0xff] }
  0x22   : > { %3152 = vmatprep.subr.bf16.mxu1 %v3591_v15  ;;  %v694_v34 = vsel %vm480_vm0, %v691_v19, %v693_v27  ;;  %v3192_v35 = vpack.c.bf16 %v2586_v31, %v2585_v29  ;;  %v2589_v42 = vld [vmem:[%s4560_s5 + $0x120] sm:$0xff]  ;;  %v2590_v43 = vld [vmem:[%s4560_s5 + $0x128] sm:$0xff]  ;;  %v2591_v46 = vld [vmem:[%s4560_s5 + $0x130] sm:$0xff]  ;;  %p3534_p2 = por %p3533_p1, %p3532_p0 }
  0x23   : > { %2554 = vmatmul.mubr.msk.f32.gmra.mrb[2].mxu0 %vm471_vm4, %v468_v39  ;;  %v856_v39 = vld [vmem:[%s4560_s5 + $0xb0] sm:$0xff]  ;;  %v3198_v45 = vpack.c.bf16 %v2590_v43, %v2589_v42  ;;  %v2592_v47 = vld [vmem:[%s4560_s5 + $0x138] sm:$0xff]  ;;  %v2593_v49 = vld [vmem:[%s4560_s5 + $0x140] sm:$0xff] }
  0x24   : > { %563 = vmatprep.mubr.f32.mxu0 %v3589_v7  ;;  %3132 = vmatpush1.bf16.msk.msra.mxu0 %vm3734_vm2, %v3130_v41  ;;  %v3195_v41 = vpack.c.bf16 %v2588_v37, %v2587_v36  ;;  %v2594_v50 = vld [vmem:[%s4560_s5 + $0x148] sm:$0xff]  ;;  %v2595_v52 = vld [vmem:[%s4560_s5 + $0x150] sm:$0xff]  ;;  %v2596_v53 = vld [vmem:[%s4560_s5 + $0x158] sm:$0xff]  ;;  %p3535_p3 = pnand %p3534_p2, %p3528_p13 }
  0x25   : > { %3134 = vmatprep.subr.bf16.mxu0 %v3133_v44  ;;  %3154 = vmatpush1.bf16.msra.mxu1 %v3153_v56  ;;  %v3204_v51 = vpack.c.bf16 %v2594_v50, %v2593_v49  ;;  %v3207_v54 = vpack.c.bf16 %v2596_v53, %v2595_v52  ;;  %v2597_v55 = vld [vmem:[%s4560_s5 + $0x160] sm:$0xff]  ;;  %v2598_v56 = vld [vmem:[%s4560_s5 + $0x168] sm:$0xff]  ;;  %v2599_v58 = vld [vmem:[%s4560_s5 + $0x170] sm:$0xff] }
  0x26   : > { %3155 = vmatprep.subr.bf16.mxu1 %v3591_v15  ;;  %v3210_v57 = vpack.c.bf16 %v2598_v56, %v2597_v55  ;;  %v2601_v61 = vld [vmem:[%s4560_s5 + $0x180] sm:$0xff]  ;;  %v2602_v62 = vld [vmem:[%s4560_s5 + $0x188] sm:$0xff]  ;;  %v2603_v0 = vld [vmem:[%s4560_s5 + $0x190] sm:$0xff] }
  0x27   : > { %2555 = vmatmul.mubr.msk.f32.gmra.mrb[4].mxu0 %vm471_vm4, %v470_v48  ;;  %v3201_v48 = vpack.c.bf16 %v2592_v47, %v2591_v46  ;;  %v2604_v1 = vld [vmem:[%s4560_s5 + $0x198] sm:$0xff]  ;;  %v859_v4 = vld [vmem:[%s4560_s5 + $0xc8] sm:$0xff]  ;;  %v2605_v5 = vld [vmem:[%s4560_s5 + $0x1a0] sm:$0xff] }
  0x28   : > { %569 = vmatprep.mubr.f32.mxu0 %v3589_v7  ;;  %v2606_v8 = vld [vmem:[%s4560_s5 + $0x1a8] sm:$0xff]  ;;  %v860_v10 = vld [vmem:[%s4560_s5 + $0xd0] sm:$0xff]  ;;  %v861_v11 = vld [vmem:[%s4560_s5 + $0xd8] sm:$0xff] }
  0x29   : > { %3157 = vmatpush1.bf16.msra.mxu1 %v3156_v63  ;;  %v3216_v63 = vpack.c.bf16 %v2602_v62, %v2601_v61  ;;  %v3222_v9 = vpack.c.bf16 %v2606_v8, %v2605_v5  ;;  %v2607_v12 = vld [vmem:[%s4560_s5 + $0x1b0] sm:$0xff]  ;;  %v3183_v13 = vpack.c.bf16 %v861_v11, %v860_v10 }
  0x2a   : > { %3158 = vmatprep.subr.bf16.mxu1 %v3591_v15  ;;  %v2616_v10 = vld [vmem:[%s4561_s6 + $0x10] sm:$0xff] }
  0x2b   : > { %2556 = vmatmul.mubr.msk.f32.gmra.mrb[6].mxu0 %vm471_vm4, %v469_v40  ;;  %v857_v40 = vld [vmem:[%s4560_s5 + $0xb8] sm:$0xff]  ;;  %v2621_v11 = vld [vmem:[%s4558_s3 + $0x70] sm:$0xff] }
  0x2c   : > { %654 = vmatprep.mubr.f32.mxu0 %v3589_v7  ;;  %v3177_v44 = vpack.c.bf16 %v857_v40, %v856_v39 }
  0x2d   : > { %3160 = vmatpush1.bf16.msra.mxu1 %v3159_v3  ;;  %v858_v3 = vld [vmem:[%s4560_s5 + $0xc0] sm:$0xff] }
  0x2e   : > { %3161 = vmatprep.subr.bf16.mxu1 %v3591_v15 }
  0x2f   : > { %2559 = vmatmul.mubr.msk.f32.vlgmr.msra.gmra.mrb[0].mxu0 %vm471_vm4, %v3769_v22  ;;  %v2584_v22 = vld [vmem:[%s4560_s5 + $0xf8] sm:$0xff] }
  0x30   : > { %660 = vmatprep.mubr.f32.mxu0 %v3589_v7  ;;  %3136 = vmatpush1.bf16.msra.mxu0 %v3135_v59  ;;  %v3189_v28 = vpack.c.bf16 %v2584_v22, %v2583_v21  ;;  %v2600_v59 = vld [vmem:[%s4560_s5 + $0x178] sm:$0xff] }
  0x31   : > { %3139 = vmatprep.subr.msk.bf16.mxu0 %vm3734_vm2, %v3137_v60  ;;  %3163 = vmatpush1.bf16.msra.mxu1 %v3162_v6  ;;  %v3213_v60 = vpack.c.bf16 %v2600_v59, %v2599_v58  ;;  %v3180_v6 = vpack.c.bf16 %v859_v4, %v858_v3 }
  0x32   : > { %3164 = vmatprep.subr.bf16.mxu1 %v3591_v15 }
  0x33   : > { %2560 = vmatmul.mubr.msk.f32.gmra.mrb[2].mxu0 %vm471_vm4, %v3771_v23  ;;  %v3168_v23 = vpack.c.bf16 %v851_v17, %v850_v16  ;;  %v808_v17 = vlaneseq }
  0x34   : > { %666 = vmatprep.mubr.f32.mxu0 %v3589_v7  ;;  %3142 = vmatpush1.bf16.msk.msra.mxu0 %vm3734_vm2, %v3140_v2  ;;  %v3219_v2 = vpack.c.bf16 %v2604_v1, %v2603_v0 }
  0x35   : > { %3185 = vmatprep.subr.bf16.mxu0 %v3591_v15  ;;  %3166 = vmatpush1.bf16.msra.mxu1 %v3165_v14  ;;  %v2608_v14 = vld [vmem:[%s4560_s5 + $0x1b8] sm:$0xff] }
  0x36   : > { %3167 = vmatprep.subr.bf16.mxu1 %v3591_v15  ;;  %v3225_v16 = vpack.c.bf16 %v2608_v14, %v2607_v12  ;;  %v2622_v12 = vld [vmem:[%s4558_s3 + $0x78] sm:$0xff]  ;;  %v2623_v14 = vld [vmem:[%s4558_s3 + $0x80] sm:$0xff] }
  0x37   : > { %2561 = vmatmul.mubr.msk.f32.gmra.mrb[4].mxu0 %vm471_vm4, %v3773_v24  ;;  %v853_v24 = vld [vmem:[%s4560_s5 + $0x98] sm:$0xff] }
  0x38   : > { %672 = vmatprep.mubr.f32.mxu0 %v3589_v7  ;;  %v3171_v32 = vpack.c.bf16 %v853_v24, %v852_v25 }
  0x39   : > { %3169 = vmatpush1.bf16.msra.mxu1 %v3168_v23 }
  0x3a   : > { %3170 = vmatprep.subr.bf16.mxu1 %v3591_v15 }
  0x3b   : > { %2562 = vmatmul.mubr.msk.f32.gmra.mrb[6].mxu0 %vm471_vm4, %v3783_v30  ;;  %v854_v30 = vld [vmem:[%s4560_s5 + $0xa0] sm:$0xff] }
  0x3c   : > { %773 = vmatprep.mubr.f32.mxu0 %v3589_v7  ;;  %v3174_v38 = vpack.c.bf16 %v855_v33, %v854_v30 }
  0x3d   : > { %3172 = vmatpush1.bf16.msra.mxu1 %v3171_v32 }
  0x3e   : > { %3173 = vmatprep.subr.bf16.mxu1 %v3591_v15 }
  0x3f   : > { %2573 = vmatmul.mubr.msk.f32.vlgmr.msra.gmra.mrb[0].mxu0 %vm471_vm4, %v690_v18  ;;  %v809_v18 = vshrl.u32 %v808_v17, 7  ;;  %v2617_v17 = vld [vmem:[%s4561_s6 + $0x18] sm:$0x3f] }
  0x40   : > { %779 = vmatprep.mubr.f32.mxu0 %v3589_v7  ;;  %3187 = vmatpush1.bf16.msra.mxu0 %v3186_v20  ;;  %v806_v20 = vld [vmem:[%s4557_s2] sm:$0x3] }
  0x41   : > { %3188 = vmatprep.subr.bf16.mxu0 %v3591_v15  ;;  %3175 = vmatpush1.bf16.msra.mxu1 %v3174_v38  ;;  %v810_v19 = vsub.s32 0, %v809_v18  ;;  %v814_v21 = vsub.s32 1, %v809_v18 }
  0x42   : > { %3176 = vmatprep.subr.bf16.mxu1 %v3591_v15 }
  0x43   : > { %2574 = vmatmul.mubr.msk.f32.gmra.mrb[2].mxu0 %vm471_vm4, %v692_v26  ;;  %v811_v22 = vrot.slane %v806_v20, %v810_v19  ;;  %v815_v23 = vrot.slane %v806_v20, %v814_v21  ;;  %v2625_v19 = vld [vmem:[%s4558_s3 + $0x90] sm:$0xff]  ;;  %v2626_v20 = vld [vmem:[%s4558_s3 + $0x98] sm:$0xff] }
  0x44   : > { %785 = vmatprep.mubr.f32.mxu0 %v3589_v7  ;;  %3190 = vmatpush1.bf16.msra.mxu0 %v3189_v28  ;;  %v3255_v21 = vpack.c.bf16 %v2626_v20, %v2625_v19  ;;  %v1265_v19 = vld [vmem:[%s4558_s3 + $0x68] sm:$0xff] }
  0x45   : > { %3191 = vmatprep.subr.bf16.mxu0 %v3591_v15  ;;  %3178 = vmatpush1.bf16.msra.mxu1 %v3177_v44 }
  0x46   : > { %3179 = vmatprep.subr.bf16.mxu1 %v3591_v15 }
  0x47   : > { %2575 = vmatmul.mubr.msk.f32.gmra.mrb[4].mxu0 %vm471_vm4, %v694_v34 }
  0x48   : > { %791 = vmatprep.mubr.f32.mxu0 %v3589_v7  ;;  %3193 = vmatpush1.bf16.msra.mxu0 %v3192_v35 }
  0x49   : > { %3194 = vmatprep.subr.bf16.mxu0 %v3591_v15  ;;  %3181 = vmatpush1.bf16.msra.mxu1 %v3180_v6 }
  0x4a   : > { %3182 = vmatprep.subr.bf16.mxu1 %v3591_v15 }
  0x4b   : > { %2576 = vmatmul.mubr.msk.f32.gmra.mrb[6].mxu0 %vm471_vm4, %v693_v27 }
  0x4c   : > { %3196 = vmatpush1.bf16.msra.mxu0 %v3195_v41 }
  0x4d   : > { %3197 = vmatprep.subr.bf16.mxu0 %v3591_v15  ;;  %3184 = vmatpush1.bf16.msra.mxu1 %v3183_v13  ;;  %v3247_v13 = vpack.c.bf16 %v2622_v12, %v2621_v11  ;;  %v1260_v11 = vld [vmem:[%s4558_s3 + $0x40] sm:$0xff]  ;;  %v1261_v12 = vld [vmem:[%s4558_s3 + $0x48] sm:$0xff] }
  0x50   : > { %3199 = vmatpush1.bf16.msra.mxu0 %v3198_v45 }
  0x51   : > { %3200 = vmatprep.subr.bf16.mxu0 %v3591_v15 }
  0x54   : > { %3202 = vmatpush1.bf16.msra.mxu0 %v3201_v48  ;;  %v1078_v48 = vld [vmem:[%s4561_s6] sm:$0xff] }
  0x55   : > { %3203 = vmatprep.subr.bf16.mxu0 %v3591_v15 }
  0x58   : > { %3205 = vmatpush1.bf16.msra.mxu0 %v3204_v51 }
  0x59   : > { %3206 = vmatprep.subr.bf16.mxu0 %v3591_v15 }
  0x5c   : > { %3208 = vmatpush1.bf16.msra.mxu0 %v3207_v54 }
  0x5d   : > { %3209 = vmatprep.subr.bf16.mxu0 %v3591_v15 }
  0x60   : > { %3211 = vmatpush1.bf16.msra.mxu0 %v3210_v57 }
  0x61   : > { %3212 = vmatprep.subr.bf16.mxu0 %v3591_v15 }
  0x64   : > { %3214 = vmatpush1.bf16.msra.mxu0 %v3213_v60 }
  0x65   : > { %3215 = vmatprep.subr.bf16.mxu0 %v3591_v15 }
  0x68   : > { %3217 = vmatpush1.bf16.msra.mxu0 %v3216_v63 }
  0x69   : > { %3218 = vmatprep.subr.bf16.mxu0 %v3591_v15 }
  0x6c   : > { %3220 = vmatpush1.bf16.msra.mxu0 %v3219_v2 }
  0x6d   : > { %3221 = vmatprep.subr.bf16.mxu0 %v3591_v15 }
  0x70   : > { %3223 = vmatpush1.bf16.msra.mxu0 %v3222_v9  ;;  %v1079_v9 = vld [vmem:[%s4561_s6 + $0x8] sm:$0x3f] }
  0x71   : > { %3224 = vmatprep.subr.bf16.mxu0 %v3591_v15 }
  0x74   : > { %3226 = vmatpush1.bf16.msra.mxu0 %v3225_v16  ;;  %v2624_v16 = vld [vmem:[%s4558_s3 + $0x88] sm:$0xff] }
  0x75   : > { %v3251_v18 = vpack.c.bf16 %v2624_v16, %v2623_v14  ;;  %v1262_v14 = vld [vmem:[%s4558_s3 + $0x50] sm:$0xff]  ;;  %v1263_v16 = vld [vmem:[%s4558_s3 + $0x58] sm:$0xff] }
 0x112   : > { %v775_v25 = vpop.f32.mrb[0].mxu0 }
 0x113   : > { %v818_v24 = vadd.f32 %v811_v22, %v775_v25  ;;  %v777_v26 = vpop.f32.mrb[1].mxu0 }
 0x114   : > { %v819_v27 = vadd.f32 %v815_v23, %v777_v26  ;;  %v2630_v26 = vld [vmem:[%s4558_s3 + $0xb8] sm:$0xff] }
 0x115   : > { %v826_v31 = vmax.f32 %v818_v24, 0.0  ;;  %v2629_v24 = vld [vmem:[%s4558_s3 + $0xb0] sm:$0xff] }
 0x116   : > { %v827_v28 = vmax.f32 %v819_v27, 0.0  ;;  %v781_v29 = vpop.f32.mrb[2].mxu0  ;;  %v3263_v27 = vpack.c.bf16 %v2630_v26, %v2629_v24  ;;  %v2642_v24 = vld [vmem:[%s4558_s3 + $0xf8] sm:$0xff] }
 0x117   : > { %v820_v32 = vadd.f32 %v811_v22, %v781_v29  ;;  %v783_v30 = vpop.f32.mrb[3].mxu0  ;;  %v2632_v29 = vld [vmem:[%s4558_s3 + $0xc8] sm:$0xff] }
 0x118   : > { %v821_v33 = vadd.f32 %v815_v23, %v783_v30  ;;  %2577 = vmatprep.mubr.msk.f32.mxu1 %vm862_vm5, %v827_v28  ;;  %2609 = vmatprep.mubr.msk.f32.mxu0 %vm862_vm5, %v827_v28  ;;  %v2631_v28 = vld [vmem:[%s4558_s3 + $0xc0] sm:$0xff]  ;;  %v2634_v30 = vld [vmem:[%s4558_s3 + $0xd8] sm:$0xff] }
 0x119   : > { %940 = vmatmul.mubr.f32.vlgmr.msra.gmra.mrb[0].mxu1 %v826_v31  ;;  %1054 = vmatmul.mubr.f32.vlgmr.msra.gmra.mrb[8].mxu0 %v826_v31  ;;  %v828_v36 = vmax.f32 %v820_v32, 0.0  ;;  %v3267_v31 = vpack.c.bf16 %v2632_v29, %v2631_v28  ;;  %v2633_v32 = vld [vmem:[%s4558_s3 + $0xd0] sm:$0xff]  ;;  %v2644_v28 = vld [vmem:[%s4558_s3 + $0x108] sm:$0xff] }
 0x11a   : > { %v829_v34 = vmax.f32 %v821_v33, 0.0  ;;  %v787_v35 = vpop.f32.mrb[4].mxu0  ;;  %v3271_v33 = vpack.c.bf16 %v2634_v30, %v2633_v32  ;;  %v2646_v32 = vld [vmem:[%s4558_s3 + $0x118] sm:$0xff] }
 0x11b   : > { %v822_v37 = vadd.f32 %v811_v22, %v787_v35  ;;  %v789_v38 = vpop.f32.mrb[5].mxu0  ;;  %v1253_v35 = vld [vmem:[%s4558_s3 + $0x8] sm:$0xff] }
 0x11c   : > { %v823_v39 = vadd.f32 %v815_v23, %v789_v38  ;;  %2578 = vmatprep.mubr.msk.f32.mxu1 %vm862_vm5, %v829_v34  ;;  %2610 = vmatprep.mubr.msk.f32.mxu0 %vm862_vm5, %v829_v34  ;;  %v1252_v34 = vld [vmem:[%s4558_s3] sm:$0xff]  ;;  %v2659_v38 = vld [vmem:[%s4562_s7 + $0x68] sm:$0xff] }
 0x11d   : > { %945 = vmatmul.mubr.f32.gmra.mrb[2].mxu1 %v828_v36  ;;  %1059 = vmatmul.mubr.f32.gmra.mrb[10].mxu0 %v828_v36  ;;  %v830_v42 = vmax.f32 %v822_v37, 0.0  ;;  %v3275_v36 = vpack.c.bf16 %v1253_v35, %v1252_v34  ;;  %v2658_v37 = vld [vmem:[%s4562_s7 + $0x60] sm:$0xff]  ;;  %v2648_v34 = vld [vmem:[%s4558_s3 + $0x128] sm:$0xff] }
 0x11e   : > { %v831_v40 = vmax.f32 %v823_v39, 0.0  ;;  %v793_v41 = vpop.f32.mrb[6].mxu0  ;;  %v3355_v39 = vpack.c.bf16 %v2659_v38, %v2658_v37  ;;  %v2650_v37 = vld [vmem:[%s4558_s3 + $0x138] sm:$0xff] }
 0x11f   : > { %v824_v43 = vadd.f32 %v811_v22, %v793_v41  ;;  %v795_v44 = vpop.f32.mrb[7].mxu0  ;;  %v2627_v22 = vld [vmem:[%s4558_s3 + $0xa0] sm:$0xff]  ;;  %v2661_v41 = vld [vmem:[%s4562_s7 + $0x78] sm:$0xff] }
 0x120   : > { %v825_v45 = vadd.f32 %v815_v23, %v795_v44  ;;  %2579 = vmatprep.mubr.msk.f32.mxu1 %vm862_vm5, %v831_v40  ;;  %2611 = vmatprep.mubr.msk.f32.mxu0 %vm862_vm5, %v831_v40  ;;  %v2628_v23 = vld [vmem:[%s4558_s3 + $0xa8] sm:$0xff]  ;;  %v2660_v40 = vld [vmem:[%s4562_s7 + $0x70] sm:$0xff] }
 0x121   : > { %950 = vmatmul.mubr.f32.gmra.mrb[4].mxu1 %v830_v42  ;;  %1064 = vmatmul.mubr.f32.gmra.mrb[12].mxu0 %v830_v42  ;;  %v832_v47 = vmax.f32 %v824_v43, 0.0  ;;  %v3259_v25 = vpack.c.bf16 %v2628_v23, %v2627_v22  ;;  %v3359_v42 = vpack.c.bf16 %v2661_v41, %v2660_v40  ;;  %v2662_v43 = vld [vmem:[%s4562_s7 + $0x80] sm:$0xff]  ;;  %v2663_v44 = vld [vmem:[%s4562_s7 + $0x88] sm:$0xff] }
 0x122   : > { %v833_v46 = vmax.f32 %v825_v45, 0.0  ;;  %3356 = vmatprep.subr.bf16.mxu0 %v3355_v39  ;;  %v3363_v45 = vpack.c.bf16 %v2663_v44, %v2662_v43  ;;  %v2640_v22 = vld [vmem:[%s4558_s3 + $0xe8] sm:$0xff] }
 0x123   : > { %3358 = vmatpush3.bf16.msra.mxu0 %v3355_v39  ;;  %v2651_v39 = vld [vmem:[%s4558_s3 + $0x140] sm:$0xff]  ;;  %v2652_v40 = vld [vmem:[%s4558_s3 + $0x148] sm:$0xff] }
 0x124   : > { %2580 = vmatprep.mubr.msk.f32.mxu1 %vm862_vm5, %v833_v46  ;;  %2612 = vmatprep.mubr.msk.f32.mxu0 %vm862_vm5, %v833_v46  ;;  %v2664_v46 = vld [vmem:[%s4562_s7 + $0x90] sm:$0xff]  ;;  %v3327_v41 = vpack.c.bf16 %v2652_v40, %v2651_v39  ;;  %v1556_v43 = vld [vmem:[%s4562_s7 + $0x8] sm:$0xff] }
 0x125   : > { %955 = vmatmul.mubr.f32.gmra.mrb[6].mxu1 %v832_v47  ;;  %1069 = vmatmul.mubr.f32.gmra.mrb[14].mxu0 %v832_v47  ;;  %v2665_v47 = vld [vmem:[%s4562_s7 + $0x98] sm:$0xff]  ;;  %v1978_v40 = vld [vmem:[%s4564_s9 + $0x50] sm:$0xff] }
 0x126   : > { %2837 = vmatprep.mubr.msk.f32.mxu1 %vm1080_vm6, %v1078_v48  ;;  %3360 = vmatprep.subr.bf16.mxu0 %v3359_v42  ;;  %v3367_v48 = vpack.c.bf16 %v2665_v47, %v2664_v46  ;;  %v1558_v46 = vld [vmem:[%s4562_s7 + $0x18] sm:$0xff] }
 0x127   : > { %3362 = vmatpush3.bf16.msra.mxu0 %v3359_v42  ;;  %v1555_v42 = vld [vmem:[%s4562_s7] sm:$0xff] }
 0x128   : > { %3364 = vmatprep.subr.bf16.mxu0 %v3363_v45  ;;  %v3331_v44 = vpack.c.bf16 %v1556_v43, %v1555_v42  ;;  %v2054_v43 = vld [vmem:[%s4564_s9 + $0x60] sm:$0xff] }
 0x12b   : > { %3366 = vmatpush3.bf16.msra.mxu0 %v3363_v45  ;;  %v1557_v45 = vld [vmem:[%s4562_s7 + $0x10] sm:$0xff] }
 0x12c   : > { %3368 = vmatprep.subr.bf16.mxu0 %v3367_v48  ;;  %v3335_v47 = vpack.c.bf16 %v1558_v46, %v1557_v45 }
 0x12f   : > { %3370 = vmatpush3.bf16.msra.mxu0 %v3367_v48  ;;  %v1559_v48 = vld [vmem:[%s4562_s7 + $0x20] sm:$0xff] }
 0x1ec   : > { %v941_v49 = vpop.f32.mrb[0].mxu1  ;;  %v1055_v50 = vpop.f32.mrb[8].mxu0 }
 0x1ed   : > { %v1074_v51 = vmax.f32 %v941_v49, %v1055_v50  ;;  %v943_v52 = vpop.f32.mrb[1].mxu1  ;;  %v1057_v53 = vpop.f32.mrb[9].mxu0  ;;  %v2666_v49 = vld [vmem:[%s4562_s7 + $0xa0] sm:$0xff]  ;;  %v2667_v50 = vld [vmem:[%s4562_s7 + $0xa8] sm:$0xff] }
 0x1f0   : > { %v946_v54 = vpop.f32.mrb[2].mxu1  ;;  %v1060_v55 = vpop.f32.mrb[10].mxu0 }
 0x1f1   : > { %v1075_v56 = vmax.f32 %v946_v54, %v1060_v55  ;;  %v948_v57 = vpop.f32.mrb[3].mxu1  ;;  %v1062_v58 = vpop.f32.mrb[11].mxu0 }
 0x1f3   : > { %v3227_v59 = vpack.c.bf16 %v1075_v56, %v1074_v51  ;;  %v3371_v51 = vpack.c.bf16 %v2667_v50, %v2666_v49  ;;  %v1560_v49 = vld [vmem:[%s4562_s7 + $0x28] sm:$0xff] }
 0x1f4   : > { %v951_v60 = vpop.f32.mrb[4].mxu1  ;;  %v1065_v61 = vpop.f32.mrb[12].mxu0  ;;  %v3339_v50 = vpack.c.bf16 %v1560_v49, %v1559_v48  ;;  %v2057_v48 = vld [vmem:[%s4564_s9 + $0x78] sm:$0xff] }
 0x1f5   : > { %v1076_v62 = vmax.f32 %v951_v60, %v1065_v61  ;;  %v953_v63 = vpop.f32.mrb[5].mxu1  ;;  %v1067_v0 = vpop.f32.mrb[13].mxu0  ;;  %3228 = vmatprep.subr.bf16.mxu1 %v3227_v59  ;;  %3372 = vmatprep.subr.bf16.mxu0 %v3371_v51  ;;  %v1254_v60 = vld [vmem:[%s4558_s3 + $0x10] sm:$0xff]  ;;  %v1255_v61 = vld [vmem:[%s4558_s3 + $0x18] sm:$0xff] }
 0x1f6   : > { %3230 = vmatpush3.bf16.msra.mxu1 %v3227_v59  ;;  %3374 = vmatpush3.bf16.msra.mxu0 %v3371_v51  ;;  %v1561_v51 = vld [vmem:[%s4562_s7 + $0x30] sm:$0xff] }
 0x1f8   : > { %v956_v1 = vpop.f32.mrb[6].mxu1  ;;  %v1070_v2 = vpop.f32.mrb[14].mxu0 }
 0x1f9   : > { %v1077_v3 = vmax.f32 %v956_v1, %v1070_v2  ;;  %v958_v4 = vpop.f32.mrb[7].mxu1  ;;  %v1072_v5 = vpop.f32.mrb[15].mxu0  ;;  %v3279_v1 = vpack.c.bf16 %v1255_v61, %v1254_v60  ;;  %v2668_v60 = vld [vmem:[%s4562_s7 + $0xb0] sm:$0xff]  ;;  %v2669_v61 = vld [vmem:[%s4562_s7 + $0xb8] sm:$0xff] }
 0x1fa   : > { %v1257_v4 = vld [vmem:[%s4558_s3 + $0x28] sm:$0xff] }
 0x1fb   : > { %v3231_v8 = vpack.c.bf16 %v1077_v3, %v1076_v62  ;;  %v1256_v3 = vld [vmem:[%s4558_s3 + $0x20] sm:$0xff] }
 0x1fc   : > { %v3283_v5 = vpack.c.bf16 %v1257_v4, %v1256_v3 }
 0x1fd   : > { %3233 = vmatprep.subr.msk.bf16.mxu1 %vm4069_vm8, %v3231_v8 }
 0x1fe   : > { %3236 = vmatpush3.bf16.msk.msra.mxu1 %vm4069_vm8, %v3231_v8 }
 0x1ff   : > { %3238 = vmatprep.subr.bf16.mxu1 %v3227_v59 }
 0x201   : > { %2838 = vmatmul.mubr.msk.f32.vlgmr.msra.gmra.mrb[8].mxu1 %vm1080_vm6, %v1079_v9  ;;  %v1259_v9 = vld [vmem:[%s4558_s3 + $0x38] sm:$0xff] }
 0x202   : > { %3240 = vmatpush3.bf16.msra.mxu1 %v3227_v59  ;;  %2848 = vmatprep.mubr.msk.f32.mxu1 %vm1080_vm6, %v2616_v10 }
 0x203   : > { %3243 = vmatprep.subr.msk.bf16.mxu1 %vm4069_vm8, %v3231_v8 }
 0x206   : > { %3246 = vmatpush3.bf16.msk.msra.mxu1 %vm4069_vm8, %v3231_v8  ;;  %v1258_v8 = vld [vmem:[%s4558_s3 + $0x30] sm:$0xff] }
 0x207   : > { %3248 = vmatprep.subr.bf16.mxu1 %v3247_v13  ;;  %v3287_v10 = vpack.c.bf16 %v1259_v9, %v1258_v8 }
 0x209   : > { %2849 = vmatmul.mubr.msk.f32.vlgmr.msra.gmra.mrb[10].mxu1 %vm1080_vm6, %v2617_v17  ;;  %v3295_v17 = vpack.c.bf16 %v1263_v16, %v1262_v14  ;;  %v1738_v16 = vld [vmem:[%s4563_s8] sm:$0x3f] }
 0x20a   : > { %3250 = vmatpush3.bf16.msra.mxu1 %v3247_v13  ;;  %v3291_v13 = vpack.c.bf16 %v1261_v12, %v1260_v11 }
 0x20b   : > { %3252 = vmatprep.subr.bf16.mxu1 %v3251_v18 }
 0x20e   : > { %3254 = vmatpush3.bf16.msra.mxu1 %v3251_v18  ;;  %v1264_v18 = vld [vmem:[%s4558_s3 + $0x60] sm:$0xff] }
 0x20f   : > { %3256 = vmatprep.subr.bf16.mxu1 %v3255_v21  ;;  %v3299_v20 = vpack.c.bf16 %v1265_v19, %v1264_v18  ;;  %v1894_v18 = vld [vmem:[%s4564_s9 + $0x8] sm:$0xff] }
 0x210   : > { %v2674_v19 = vld [vmem:[%s4563_s8 + $0x8] sm:$0x3f] }
 0x212   : > { %3258 = vmatpush3.bf16.msra.mxu1 %v3255_v21  ;;  %v2639_v21 = vld [vmem:[%s4558_s3 + $0xe0] sm:$0xff] }
 0x213   : > { %3260 = vmatprep.subr.bf16.mxu1 %v3259_v25  ;;  %v3303_v23 = vpack.c.bf16 %v2640_v22, %v2639_v21  ;;  %v1895_v21 = vld [vmem:[%s4564_s9 + $0x10] sm:$0xff]  ;;  %v1896_v22 = vld [vmem:[%s4564_s9 + $0x18] sm:$0xff] }
 0x214   : > { %v3391_v6 = vpack.c.bf16 %v1896_v22, %v1895_v21 }
 0x216   : > { %3262 = vmatpush3.bf16.msra.mxu1 %v3259_v25  ;;  %v2641_v25 = vld [vmem:[%s4558_s3 + $0xf0] sm:$0xff] }
 0x217   : > { %3264 = vmatprep.subr.bf16.mxu1 %v3263_v27  ;;  %v3307_v26 = vpack.c.bf16 %v2642_v24, %v2641_v25  ;;  %v1898_v25 = vld [vmem:[%s4564_s9 + $0x28] sm:$0xff] }
 0x21a   : > { %3266 = vmatpush3.bf16.msra.mxu1 %v3263_v27  ;;  %v2643_v27 = vld [vmem:[%s4558_s3 + $0x100] sm:$0xff] }
 0x21b   : > { %3268 = vmatprep.subr.bf16.mxu1 %v3267_v31  ;;  %v3311_v29 = vpack.c.bf16 %v2644_v28, %v2643_v27  ;;  %v2376_v27 = vld [vmem:[%s4566_s11 + $0x8] sm:$0xff] }
 0x21e   : > { %3270 = vmatpush3.bf16.msra.mxu1 %v3267_v31  ;;  %v2645_v31 = vld [vmem:[%s4558_s3 + $0x110] sm:$0xff] }
 0x21f   : > { %3272 = vmatprep.subr.bf16.mxu1 %v3271_v33  ;;  %v3315_v30 = vpack.c.bf16 %v2646_v32, %v2645_v31  ;;  %v1974_v32 = vld [vmem:[%s4564_s9 + $0x30] sm:$0xff] }
 0x222   : > { %3274 = vmatpush3.bf16.msra.mxu1 %v3271_v33  ;;  %v2647_v33 = vld [vmem:[%s4558_s3 + $0x120] sm:$0xff] }
 0x223   : > { %3276 = vmatprep.subr.bf16.mxu1 %v3275_v36  ;;  %v3319_v35 = vpack.c.bf16 %v2648_v34, %v2647_v33 }
 0x2d4   : > { %v2839_v52 = vpop.f32.mrb[8].mxu1 }
 0x2d5   : > { %v1157_v53 = vpop.f32.mrb[9].mxu1 }
 0x2dc   : > { %v2850_v54 = vpop.f32.mrb[10].mxu1 }
 0x2dd   : > { %v4171_v55 = vmax.f32 %v2839_v52, %v2850_v54  ;;  %v1241_v56 = vpop.f32.mrb[11].mxu1  ;;  %v1562_v52 = vld [vmem:[%s4562_s7 + $0x38] sm:$0xff]  ;;  %v1563_v54 = vld [vmem:[%s4562_s7 + $0x40] sm:$0xff] }
 0x2de   : > { %v1250_v57 = vmax.f32 %v1157_v53, %v1241_v56  ;;  %v3343_v53 = vpack.c.bf16 %v1562_v52, %v1561_v51  ;;  %v2059_v51 = vld [vmem:[%s4564_s9 + $0x88] sm:$0xff] }
 0x2df   : > { %v1284_v58 = vrot.slane %v4171_v55, 1  ;;  %v1461_v59 = vrot.slane %v4171_v55, 2 }
 0x2e0   : > { %v1283_v62 = vrot.slane %v1250_v57, 1  ;;  %v1460_v63 = vrot.slane %v1250_v57, 2 }
 0x2e2   : > { %v1285_v0 = vsel %vm463_vm3, %v1283_v62, %v1284_v58  ;;  %v1462_v2 = vsel %vm480_vm0, %v1460_v63, %v1461_v59  ;;  %v3375_v62 = vpack.c.bf16 %v2669_v61, %v2668_v60  ;;  %v2655_v63 = vld [vmem:[%s4559_s4] ss:$0 sm:$0xff]  ;;  %v2138_v60 = vld [vmem:[%s4564_s9 + $0xb0] sm:$0xff]  ;;  %v2139_v61 = vld [vmem:[%s4564_s9 + $0xb8] sm:$0xff] }
 0x2e3   : > { %2879 = vmatprep.mubr.msk.f32.mxu1 %vm1286_vm9, %v1285_v0 }
 0x2e4   : > { %2880 = vmatmul.mubr.msk.f32.vlgmr.msra.gmra.mrb[12].mxu1 %vm1286_vm9, %v1284_v58  ;;  %v1566_v58 = vld [vmem:[%s4562_s7 + $0x58] sm:$0xff]  ;;  %3376 = vmatprep.subr.bf16.mxu0 %v3375_v62 }
 0x2e5   : > { %3278 = vmatpush3.bf16.msra.mxu1 %v3275_v36  ;;  %2910 = vmatprep.mubr.msk.f32.mxu1 %vm1286_vm9, %v1250_v57  ;;  %v2649_v36 = vld [vmem:[%s4558_s3 + $0x130] sm:$0xff] }
 0x2e6   : > { %3280 = vmatprep.subr.bf16.mxu1 %v3279_v1  ;;  %v3323_v38 = vpack.c.bf16 %v2650_v37, %v2649_v36  ;;  %v1565_v57 = vld [vmem:[%s4562_s7 + $0x50] sm:$0xff]  ;;  %3378 = vmatpush3.bf16.msra.mxu0 %v3375_v62  ;;  %v1976_v37 = vld [vmem:[%s4564_s9 + $0x40] sm:$0xff]  ;;  %v3421_v62 = vpack.c.bf16 %v2139_v61, %v2138_v60 }
 0x2e7   : > { %3379 = vmatprep.subr.bf16.mxu0 %v3591_v15 }
 0x2e9   : > { %3282 = vmatpush3.bf16.msra.mxu1 %v3279_v1 }
 0x2ea   : > { %3284 = vmatprep.subr.bf16.mxu1 %v3283_v5 }
 0x2ed   : > { %3286 = vmatpush3.bf16.msra.mxu1 %v3283_v5 }
 0x2ee   : > { %3288 = vmatprep.subr.bf16.mxu1 %v3287_v10 }
 0x2f1   : > { %3290 = vmatpush3.bf16.msra.mxu1 %v3287_v10 }
 0x2f2   : > { %3292 = vmatprep.subr.bf16.mxu1 %v3291_v13 }
 0x2f5   : > { %3294 = vmatpush3.bf16.msra.mxu1 %v3291_v13 }
 0x2f6   : > { %3296 = vmatprep.subr.bf16.mxu1 %v3295_v17 }
 0x2f9   : > { %3298 = vmatpush3.bf16.msra.mxu1 %v3295_v17  ;;  %v1893_v17 = vld [vmem:[%s4564_s9] sm:$0xff] }
 0x2fa   : > { %3300 = vmatprep.subr.bf16.mxu1 %v3299_v20 }
 0x2fd   : > { %3302 = vmatpush3.bf16.msra.mxu1 %v3299_v20  ;;  %v3388_v20 = vpack.c.bf16 %v1894_v18, %v1893_v17  ;;  %v2297_v17 = vld [vmem:[%s4564_s9 + $0x108] sm:$0xff] }
 0x2fe   : > { %3304 = vmatprep.subr.bf16.mxu1 %v3303_v23 }
 0x300   : > { %2911 = vmatmul.mubr.msk.f32.vlgmr.msra.gmra.mrb[12].mxu1 %vm1286_vm9, %v4171_v55  ;;  %v1564_v55 = vld [vmem:[%s4562_s7 + $0x48] sm:$0xff] }
 0x301   : > { %3306 = vmatpush3.bf16.msra.mxu1 %v3303_v23  ;;  %2941 = vmatprep.mubr.msk.f32.mxu1 %vm1286_vm9, %v1462_v2  ;;  %v3347_v56 = vpack.c.bf16 %v1564_v55, %v1563_v54  ;;  %v1897_v23 = vld [vmem:[%s4564_s9 + $0x20] sm:$0xff]  ;;  %v2135_v54 = vld [vmem:[%s4564_s9 + $0x98] sm:$0xff] }
 0x302   : > { %3308 = vmatprep.subr.bf16.mxu1 %v3307_v26  ;;  %v3394_v24 = vpack.c.bf16 %v1898_v25, %v1897_v23  ;;  %v1892_v25 = vld [vmem:[%s4565_s10] sm:$0x1] }
 0x305   : > { %3310 = vmatpush3.bf16.msra.mxu1 %v3307_v26  ;;  %v2375_v26 = vld [vmem:[%s4566_s11] sm:$0xff] }
 0x306   : > { %3312 = vmatprep.subr.bf16.mxu1 %v3311_v29  ;;  %v3442_v28 = vpack.c.bf16 %v2376_v27, %v2375_v26 }
 0x309   : > { %3314 = vmatpush3.bf16.msra.mxu1 %v3311_v29 }
 0x30a   : > { %3316 = vmatprep.subr.bf16.mxu1 %v3315_v30 }
 0x30d   : > { %3318 = vmatpush3.bf16.msra.mxu1 %v3315_v30  ;;  %v1975_v30 = vld [vmem:[%s4564_s9 + $0x38] sm:$0xff] }
 0x30e   : > { %3320 = vmatprep.subr.bf16.mxu1 %v3319_v35  ;;  %v3397_v34 = vpack.c.bf16 %v1975_v30, %v1974_v32 }
 0x311   : > { %3322 = vmatpush3.bf16.msra.mxu1 %v3319_v35 }
 0x312   : > { %3324 = vmatprep.subr.bf16.mxu1 %v3323_v38 }
 0x315   : > { %3326 = vmatpush3.bf16.msra.mxu1 %v3323_v38  ;;  %v1977_v38 = vld [vmem:[%s4564_s9 + $0x48] sm:$0xff] }
 0x316   : > { %3328 = vmatprep.subr.bf16.mxu1 %v3327_v41  ;;  %v3400_v39 = vpack.c.bf16 %v1977_v38, %v1976_v37 }
 0x319   : > { %3330 = vmatpush3.bf16.msra.mxu1 %v3327_v41  ;;  %v1979_v41 = vld [vmem:[%s4564_s9 + $0x58] sm:$0xff] }
 0x31a   : > { %3332 = vmatprep.subr.bf16.mxu1 %v3331_v44  ;;  %v3403_v42 = vpack.c.bf16 %v1979_v41, %v1978_v40 }
 0x31c   : > { %2942 = vmatmul.mubr.msk.f32.vlgmr.msra.gmra.mrb[12].mxu1 %vm1286_vm9, %v1461_v59  ;;  %v3351_v59 = vpack.c.bf16 %v1566_v58, %v1565_v57  ;;  %v2136_v57 = vld [vmem:[%s4564_s9 + $0xa0] sm:$0xff]  ;;  %v2137_v58 = vld [vmem:[%s4564_s9 + $0xa8] sm:$0xff] }
 0x31d   : > { %3334 = vmatpush3.bf16.msra.mxu1 %v3331_v44  ;;  %v2055_v44 = vld [vmem:[%s4564_s9 + $0x68] sm:$0xff] }
 0x31e   : > { %3336 = vmatprep.subr.bf16.mxu1 %v3335_v47  ;;  %v3406_v45 = vpack.c.bf16 %v2055_v44, %v2054_v43 }
 0x321   : > { %3338 = vmatpush3.bf16.msra.mxu1 %v3335_v47  ;;  %v2056_v47 = vld [vmem:[%s4564_s9 + $0x70] sm:$0xff] }
 0x322   : > { %3340 = vmatprep.subr.bf16.mxu1 %v3339_v50  ;;  %v3409_v49 = vpack.c.bf16 %v2057_v48, %v2056_v47 }
 0x325   : > { %3342 = vmatpush3.bf16.msra.mxu1 %v3339_v50  ;;  %v2058_v50 = vld [vmem:[%s4564_s9 + $0x80] sm:$0xff] }
 0x326   : > { %3344 = vmatprep.subr.bf16.mxu1 %v3343_v53  ;;  %v3412_v52 = vpack.c.bf16 %v2059_v51, %v2058_v50 }
 0x329   : > { %3346 = vmatpush3.bf16.msra.mxu1 %v3343_v53  ;;  %v2134_v53 = vld [vmem:[%s4564_s9 + $0x90] sm:$0xff] }
 0x32a   : > { %3348 = vmatprep.subr.bf16.mxu1 %v3347_v56  ;;  %v3415_v55 = vpack.c.bf16 %v2135_v54, %v2134_v53 }
 0x32d   : > { %3350 = vmatpush3.bf16.msra.mxu1 %v3347_v56 }
 0x32e   : > { %3352 = vmatprep.subr.bf16.mxu1 %v3351_v59 }
 0x331   : > { %3354 = vmatpush3.bf16.msra.mxu1 %v3351_v59  ;;  %v3418_v59 = vpack.c.bf16 %v2137_v58, %v2136_v57 }
 0x332   : > { %3441 = vmatprep.subr.bf16.mxu1 %v3591_v15 }
 0x3ef   : > { %v2943_v0 = vpop.f32.mrb[12].mxu1 }
 0x3f0   : > { %v1552_v1 = vadd.f32 %v2943_v0, %v2655_v63  ;;  %v1533_v2 = vpop.f32.mrb[13].mxu1  ;;  %v2215_v0 = vld [vmem:[%s4564_s9 + $0xc8] sm:$0xff] }
 0x3f1   : > { %v1551_v3 = vadd.f32 %v2655_v63, %v1533_v2  ;;  %v2214_v63 = vld [vmem:[%s4564_s9 + $0xc0] sm:$0xff] }
 0x3f2   : > { %v1554_v5 = vmax.f32 %v1552_v1, 0.0  ;;  %v3424_v1 = vpack.c.bf16 %v2215_v0, %v2214_v63 }
 0x3f3   : > { %v1553_v4 = vmax.f32 %v1551_v3, 0.0  ;;  %v2216_v3 = vld [vmem:[%s4564_s9 + $0xd0] sm:$0xff] }
 0x3f5   : > { %2968 = vmatprep.mubr.msk.f32.mxu1 %vm862_vm5, %v1553_v4  ;;  %2995 = vmatprep.mubr.msk.f32.mxu0 %vm862_vm5, %v1553_v4  ;;  %v2217_v4 = vld [vmem:[%s4564_s9 + $0xd8] sm:$0xff] }
 0x3f6   : > { %2969 = vmatmul.mubr.msk.f32.vlgmr.msra.gmra.mrb[14].mxu1 %vm862_vm5, %v1554_v5  ;;  %2996 = vmatmul.mubr.msk.f32.vlgmr.msra.gmra.mrb[16].mxu0 %vm862_vm5, %v1554_v5  ;;  %v3427_v5 = vpack.c.bf16 %v2217_v4, %v2216_v3 }
 0x3f7   : > { %3002 = vmatprep.mubr.msk.f32.mxu0 %vm3592_vm10, %v3589_v7  ;;  %3110 = vmatprep.mubr.msk.f32.mxu1 %vm3592_vm10, %v3589_v7 }
 0x3f8   : > { %3443 = vmatpush3.bf16.msra.mxu1 %v3442_v28  ;;  %v2379_v28 = vld [vmem:[%s4567_s12] sm:$0x1] }
 0x3f9   : > { %3444 = vmatprep.subr.bf16.mxu1 %v3591_v15 }
 0x4c9   : > { %v2970_v8 = vpop.f32.mrb[14].mxu1  ;;  %v2997_v9 = vpop.f32.mrb[16].mxu0 }
 0x4ca   : > { %v1737_v10 = vmax.f32 %v2970_v8, %v2997_v9  ;;  %v1639_v11 = vpop.f32.mrb[15].mxu1  ;;  %v1727_v12 = vpop.f32.mrb[17].mxu0  ;;  %v2218_v8 = vld [vmem:[%s4564_s9 + $0xe0] sm:$0xff]  ;;  %v2219_v9 = vld [vmem:[%s4564_s9 + $0xe8] sm:$0xff] }
 0x4cb   : > { %v1736_v13 = vmax.f32 %v1639_v11, %v1727_v12  ;;  %v2294_v11 = vld [vmem:[%s4564_s9 + $0xf0] sm:$0xff]  ;;  %v2295_v12 = vld [vmem:[%s4564_s9 + $0xf8] sm:$0xff] }
 0x4cd   : > { %v3380_v14 = vpack.c.bf16 %v1737_v10, %v1736_v13  ;;  %v3430_v10 = vpack.c.bf16 %v2219_v9, %v2218_v8  ;;  %v3433_v13 = vpack.c.bf16 %v2295_v12, %v2294_v11 }
 0x4cf   : > { %3382 = vmatpush3.bf16.msk.msra.mxu0 %vm4069_vm8, %v3380_v14 }
 0x4d0   : > { %3383 = vmatprep.subr.bf16.mxu0 %v3591_v15 }
 0x4d2   : > { %3003 = vmatmul.mubr.msk.f32.vlgmr.msra.gmra.mrb[18].mxu0 %vm1739_vm11, %v1738_v16  ;;  %v2296_v16 = vld [vmem:[%s4564_s9 + $0x100] sm:$0xff] }
 0x4d3   : > { %3386 = vmatpush3.bf16.msk.msra.mxu0 %vm4069_vm8, %v3380_v14  ;;  %3009 = vmatprep.mubr.msk.f32.mxu0 %vm3592_vm10, %v3589_v7  ;;  %v3436_v18 = vpack.c.bf16 %v2297_v17, %v2296_v16 }
 0x4d4   : > { %3387 = vmatprep.subr.bf16.mxu0 %v3591_v15 }
 0x4d6   : > { %3010 = vmatmul.mubr.msk.f32.vlgmr.msra.gmra.mrb[20].mxu0 %vm1739_vm11, %v2674_v19  ;;  %v2298_v19 = vld [vmem:[%s4564_s9 + $0x110] sm:$0xff] }
 0x4d7   : > { %3389 = vmatpush3.bf16.msra.mxu0 %v3388_v20  ;;  %3024 = vmatprep.mubr.msk.f32.mxu0 %vm3592_vm10, %v3589_v7  ;;  %v2299_v20 = vld [vmem:[%s4564_s9 + $0x118] sm:$0xff] }
 0x4d8   : > { %3390 = vmatprep.subr.bf16.mxu0 %v3591_v15  ;;  %v3439_v21 = vpack.c.bf16 %v2299_v20, %v2298_v19 }
 0x4db   : > { %3392 = vmatpush3.bf16.msra.mxu0 %v3391_v6  ;;  %v2378_v6 = vld [vmem:[%s4566_s11 + $0x18] sm:$0xff] }
 0x4dc   : > { %3393 = vmatprep.subr.bf16.mxu0 %v3591_v15 }
 0x4df   : > { %3395 = vmatpush3.bf16.msra.mxu0 %v3394_v24 }
 0x4e0   : > { %3396 = vmatprep.subr.bf16.mxu0 %v3591_v15 }
 0x5a5   : > { %v1812_v29 = vpop.f32.mrb[18].mxu0 }
 0x5a6   : > { %v3004_v31 = vpop.f32.mrb[19].mxu0 }
 0x5a9   : > { %v1887_v33 = vpop.f32.mrb[20].mxu0 }
 0x5aa   : > { %v4371_v35 = vmax.f32 %v1812_v29, %v1887_v33  ;;  %v3011_v36 = vpop.f32.mrb[21].mxu0 }
 0x5ac   : > { %3025 = vmatmul.mubr.msk.f32.vlgmr.msra.gmra.mrb[22].mxu0 %vm1899_vm12, %v4371_v35  ;;  %v1980_v46 = vrot.slane %v4371_v35, 1  ;;  %v2060_v56 = vrot.slane %v4371_v35, 2  ;;  %v2140_v2 = vrot.slane %v4371_v35, 3  ;;  %v2220_v14 = vrot.slane %v4371_v35, 4 }
 0x5ad   : > { %3398 = vmatpush3.bf16.msra.mxu0 %v3397_v34  ;;  %3039 = vmatprep.mubr.msk.f32.mxu0 %vm3592_vm10, %v3589_v7  ;;  %v2300_v22 = vrot.slane %v4371_v35, 5 }
 0x5ae   : > { %3399 = vmatprep.subr.bf16.mxu0 %v3591_v15 }
 0x5b1   : > { %3401 = vmatpush3.bf16.msra.mxu0 %v3400_v39 }
 0x5b2   : > { %3402 = vmatprep.subr.bf16.mxu0 %v3591_v15 }
 0x5b5   : > { %3404 = vmatpush3.bf16.msra.mxu0 %v3403_v42 }
 0x5b6   : > { %3405 = vmatprep.subr.bf16.mxu0 %v3591_v15 }
 0x5b8   : > { %3040 = vmatmul.mubr.msk.f32.vlgmr.msra.gmra.mrb[22].mxu0 %vm1899_vm12, %v1980_v46 }
 0x5b9   : > { %3407 = vmatpush3.bf16.msra.mxu0 %v3406_v45  ;;  %3054 = vmatprep.mubr.msk.f32.mxu0 %vm3592_vm10, %v3589_v7 }
 0x5ba   : > { %3408 = vmatprep.subr.bf16.mxu0 %v3591_v15 }
 0x5bd   : > { %3410 = vmatpush3.bf16.msra.mxu0 %v3409_v49 }
 0x5be   : > { %3411 = vmatprep.subr.bf16.mxu0 %v3591_v15 }
 0x5c1   : > { %3413 = vmatpush3.bf16.msra.mxu0 %v3412_v52 }
 0x5c2   : > { %3414 = vmatprep.subr.bf16.mxu0 %v3591_v15 }
 0x5c4   : > { %3055 = vmatmul.mubr.msk.f32.vlgmr.msra.gmra.mrb[22].mxu0 %vm1899_vm12, %v2060_v56 }
 0x5c5   : > { %3416 = vmatpush3.bf16.msra.mxu0 %v3415_v55  ;;  %3069 = vmatprep.mubr.msk.f32.mxu0 %vm3592_vm10, %v3589_v7 }
 0x5c6   : > { %3417 = vmatprep.subr.bf16.mxu0 %v3591_v15 }
 0x5c9   : > { %3419 = vmatpush3.bf16.msra.mxu0 %v3418_v59 }
 0x5ca   : > { %3420 = vmatprep.subr.bf16.mxu0 %v3591_v15 }
 0x5cd   : > { %3422 = vmatpush3.bf16.msra.mxu0 %v3421_v62 }
 0x5ce   : > { %3423 = vmatprep.subr.bf16.mxu0 %v3591_v15 }
 0x5d0   : > { %3070 = vmatmul.mubr.msk.f32.vlgmr.msra.gmra.mrb[22].mxu0 %vm1899_vm12, %v2140_v2 }
 0x5d1   : > { %3425 = vmatpush3.bf16.msra.mxu0 %v3424_v1  ;;  %3084 = vmatprep.mubr.msk.f32.mxu0 %vm3592_vm10, %v3589_v7 }
 0x5d2   : > { %3426 = vmatprep.subr.bf16.mxu0 %v3591_v15 }
 0x5d5   : > { %3428 = vmatpush3.bf16.msra.mxu0 %v3427_v5 }
 0x5d6   : > { %3429 = vmatprep.subr.bf16.mxu0 %v3591_v15 }
 0x5d9   : > { %3431 = vmatpush3.bf16.msra.mxu0 %v3430_v10 }
 0x5da   : > { %3432 = vmatprep.subr.bf16.mxu0 %v3591_v15 }
 0x5dc   : > { %3085 = vmatmul.mubr.msk.f32.vlgmr.msra.gmra.mrb[22].mxu0 %vm1899_vm12, %v2220_v14 }
 0x5dd   : > { %3434 = vmatpush3.bf16.msra.mxu0 %v3433_v13  ;;  %3099 = vmatprep.mubr.msk.f32.mxu0 %vm3592_vm10, %v3589_v7  ;;  %v2377_v7 = vld [vmem:[%s4566_s11 + $0x10] sm:$0xff] }
 0x5de   : > { %3435 = vmatprep.subr.bf16.mxu0 %v3591_v15  ;;  %v3445_v23 = vpack.c.bf16 %v2378_v6, %v2377_v7 }
 0x5e0   : > { %3446 = vmatpush3.bf16.msra.mxu1 %v3445_v23 }
 0x5e1   : > { %3437 = vmatpush3.bf16.msra.mxu0 %v3436_v18 }
 0x5e2   : > { %3438 = vmatprep.subr.bf16.mxu0 %v3591_v15 }
 0x5e5   : > { %3440 = vmatpush3.bf16.msra.mxu0 %v3439_v21 }
 0x5e8   : > { %3100 = vmatmul.mubr.msk.f32.vlgmr.msra.gmra.mrb[22].mxu0 %vm1899_vm12, %v2300_v22 }
 0x6bb   : > { %v2369_v15 = vpop.f32.mrb[22].mxu0 }
 0x6bc   : > { %v3447_v24 = vadd.f32 %v2369_v15, %v1892_v25  ;;  %v3101_v26 = vpop.f32.mrb[23].mxu0 }
 0x6be   : > { %v2374_v27 = vmax.f32 %v3447_v24, 0.0 }
 0x6c0   : > { %3111 = vmatmul.mubr.msk.f32.vlgmr.msra.gmra.mrb[16].mxu1 %vm2380_vm13, %v2374_v27 }
 0x793   : > { %v2450_v29 = vpop.f32.mrb[16].mxu1 }
 0x794   : > { %v2451_v31 = vadd.f32 %v2450_v29, %v2379_v28  ;;  %v3112_v32 = vpop.f32.mrb[17].mxu1 }
 0x796   : > { %v2455_v30 = vsel %vm2454_vm14, %v2451_v31, -inf }
 0x797   : > { %2456 = vmax.xlane.f32.xlu0 %v2455_v30 }
 0x824   : > { %v2457_v33 = vpop.xlane.xlu0 %2456 }
 0x825   : > { %v2458_v34 = vsub.f32 %v2451_v31, %v2457_v33 }
 0x827   : > { %v2459_v35 = vmul.f32 1.442695, %v2458_v34 }
 0x829   : > { %3521 = vpow2.f32 %v2459_v35 }
 0x833   : > { %v3522_v36 = vpop.eup %3521 }
 0x834   : > { %v2461_v37 = vsel %vm2454_vm14, %v3522_v36, 0.0 }
 0x835   : > { %2462 = vadd.xlane.f32.xlu0 %v2461_v37 }
 0x8c2   : > { %v2463_v38 = vpop.xlane.xlu0 %2462 }
 0x8c3   : > { %3523 = vlog2.f32 %v2463_v38 }
 0x8cd   : > { %v3524_v39 = vpop.eup %3523 }
 0x8ce   : > { %v2465_v40 = vmul.f32 0.6931472, %v3524_v39 }
 0x8d0   : > { %v2466_v41 = vadd.f32 %v2465_v40, %v2457_v33 }
 0x8d2   : > { %v2467_v42 = vsub.f32 %v2451_v31, %v2466_v41 }
 0x8d4   : > { %2468 = vst.msk [vmem:[%s432_s25] sm:$0x1] %vm2454_vm14, %v2467_v42 }
 0x8d5   : > { %3538 = shalt.err (!%p3535_p3)
}
 0x8d6   : > { %s3539_s16 = scalar_lea.hbm %s4512_s27, 16  ;;  %s3543_s24 = scalar_lea.hbm %s4568_s13, 32 }
 0x8d7   : > { %p3540_p4 = scmp.ne.s32.totalorder %s4512_s27, %s3539_s16  ;;  %p3544_p9 = scmp.lt.u32.totalorder %s4512_s27, %s4568_s13 }
 0x8d8   : > { %p3545_p10 = scmp.lt.u32.totalorder %s3543_s24, %s3539_s16  ;;  %p3547_p12 = scmp.lt.u32.totalorder %s3539_s16, %s4512_s27 }
 0x8d9   : > { %p3541_p7 = pnand %p3540_p4, %p3702_p5 }
 0x8da   : > { %p3546_p11 = por %p3545_p10, %p3544_p9 }
 0x8db   : > { %p3542_p8 = pneg %p3541_p7 }
 0x8dc   : > { %p3548_p13 = por %p3547_p12, %p3546_p11 }
 0x8de   : > { %p3549_p0 = pnand %p3548_p13, %p3542_p8 }
 0x8e0   : > { %3552 = shalt.err (!%p3549_p0)
}
 0x8e1   : > { %3478 = dma.vmem_to_hbm [thread:$0]  (%p3702_p5), %s4514_s19, 16, %s4512_s27, %s2470_s17  }
 0x8e2 PF: > { %s4585_s22 = sld [smem:[#allocation5_spill]]  ;;  %p3484_p1 = scmp.ge.s32.totalorder %s3587_s28, 2 }
 0x8e4   : > { %p3481_p2 = pnand %p3484_p1, %p3706_p6 }
 0x8e8   : > { %s2494_s29 = sand.u32 1, %s4585_s22  }
 0x8e9   : > { %s2495_s30 = scalar_lea.sflag [#allocation3], %s2494_s29 }
 0x8ea   : > { %3570 = dma.done.wait (!%p3481_p2), %s2495_s30, 16  }
 0x8eb   : > { %3572 = vsyncadd (!%p3481_p2), %s2495_s30, 4294967280  ;;  %s4587_s28 = sld [smem:[#allocation7_spill]]  ;;  %s4588_s15 = sld [smem:[#allocation6_spill]] }
 0x8ec   : > { %s4589_s27 = sld [smem:[#allocation8_spill]]  ;;  %s4590_s25 = smov %s3579_s26 }
 0x8f1   : > { %p23_p3 = scmp.ge.s32.totalorder %s4587_s28, 4   ;;  %s4591_s26 = smov %s4588_s15 }
 0x8f3   :  { %25 = sbr.rel (!%p23_p3) target bundleno = 3 (0x3), region = 115 }
 0x8fa   :  { %2499 = vsyncpa [#allocation3], 1 }
 0x8fb   :  { %2501 = vsyncpa [#allocation3 + $0x1], 1 }

</bundles_post_ra>
